<compile_context>
chip_gen: v5e
topology: v5e:2x2
jax: 0.10.0
libtpu: 0.0.40
codegen_flags: <defaults>
</compile_context>

<pallas_src>
import functools

import jax
import jax.numpy as jnp
from jax.experimental import pallas as pl
from jax.experimental.pallas import tpu as pltpu


def _round_up(n, m):
    return ((n + m - 1) // m) * m


# ---------------------------------------------------------------------------
# Kernel: one batch tile per grid step; weights/biases resident in VMEM.
# ---------------------------------------------------------------------------
def mlp_kernel(x_ref, w1_ref, b1_ref, w2_ref, b2_ref, w3_ref, b3_ref, o_ref,
               *, precision):
    cdt = w1_ref.dtype  # MXU operand dtype (f32 or bf16)

    x = x_ref[...].astype(cdt)

    h1 = jnp.dot(x, w1_ref[...], preferred_element_type=jnp.float32,
                 precision=precision)
    h1 = jnp.maximum(h1 + b1_ref[...].astype(jnp.float32), 0.0)

    h2 = jnp.dot(h1.astype(cdt), w2_ref[...], preferred_element_type=jnp.float32,
                 precision=precision)
    h2 = jnp.maximum(h2 + b2_ref[...].astype(jnp.float32), 0.0)

    out = jnp.dot(h2.astype(cdt), w3_ref[...], preferred_element_type=jnp.float32,
                  precision=precision)
    out = out + b3_ref[...].astype(jnp.float32)

    o_ref[...] = out.astype(o_ref.dtype)


def _vmem_limit_bytes():
    """~7/8 of physical VMEM (v5e/v6e 128 MiB -> 112 MiB, v7x 64 MiB -> 56 MiB)."""
    cap = 64 * 1024 * 1024  # safe lower bound on every generation
    try:
        cap = int(pltpu.get_tpu_info().vmem_capacity_bytes)
    except Exception:
        pass
    return int(cap * 7 // 8)


def prepare_params(params, *, weights_dtype=jnp.bfloat16):
    """Pad + cast the weights ONCE (hoisted out of the forward).

    PyTorch nn.Linear stores W as [out, in]; here W is kept as [in, out]
    (already transposed) so the kernel does plain x @ W.
      * K (input) dim: padded to a multiple of 8 (sublane alignment only).
      * hidden / num_classes dims: padded to a multiple of 128 (lane-dense
        matmuls and unmasked vst on the output slab).
      * Weights cast to `weights_dtype` (bf16 default: halves HBM/VMEM bytes
        on all generations).  Biases stay f32 (VPU bias/ReLU path).
    Zero-padding keeps the math exact; the forward slices the result back.
    """
    w1, b1 = params["l1"]
    w2, b2 = params["l2"]
    w3, b3 = params["l3"]

    d_in, hidden = w1.shape
    n_cls = w3.shape[1]

    dp = _round_up(d_in, 8)      # K dim: sublane alignment only
    hp = _round_up(hidden, 128)  # lane-dense
    cp = _round_up(n_cls, 128)   # lane-dense output slab

    wdt = jnp.dtype(weights_dtype)

    def pad2(a, rows, cols, dt):
        buf = jnp.zeros((rows, cols), dt)
        return buf.at[: a.shape[0], : a.shape[1]].set(a.astype(dt))

    return {
        "w1": pad2(w1, dp, hp, wdt), "b1": pad2(b1, 1, hp, jnp.float32),
        "w2": pad2(w2, hp, hp, wdt), "b2": pad2(b2, 1, hp, jnp.float32),
        "w3": pad2(w3, hp, cp, wdt), "b3": pad2(b3, 1, cp, jnp.float32),
        "d_in": d_in, "n_cls": n_cls, "dp": dp, "hp": hp, "cp": cp,
        "wdt": wdt,
    }


def neural_net_forward(x, prepped, *, batch_tile=256, out_dtype=jnp.float32,
                       weight_buffer_count=1):
    """x: [B, input_size] float32; prepped: output of prepare_params()."""
    B, d_in = x.shape
    assert d_in == prepped["d_in"]
    dp, hp, cp = prepped["dp"], prepped["hp"], prepped["cp"]
    n_cls = prepped["n_cls"]

    # Batch tile (multiple of 8 sublanes).
    #   * B <= batch_tile: a single grid step (splitting a small, HBM-bound
    #     batch across v7x's two cores would just duplicate the weight DMA).
    #   * batch_tile < B <= 2*batch_tile: exactly 2 steps so both v7x
    #     TensorCores get work under dimension_semantics=("parallel",).
    if B <= batch_tile:
        tb = _round_up(B, 8)
    elif B <= 2 * batch_tile:
        tb = _round_up(-(-B // 2), 8)
    else:
        tb = _round_up(batch_tile, 8)
    bp = _round_up(B, tb)
    grid = (bp // tb,)

    # Only x is padded per call; weights were padded/cast once at init.
    xp = jnp.zeros((bp, dp), jnp.float32).at[:B, :d_in].set(
        x.astype(jnp.float32))

    # f32 path: exact multi-pass MXU matmul (keeps 1e-5 parity as K grows);
    # bf16 path: default single-pass.
    precision = (jax.lax.Precision.HIGHEST
                 if prepped["wdt"] == jnp.float32 else None)
    kernel = functools.partial(mlp_kernel, precision=precision)

    itemsize = lambda a: a.size * a.dtype.itemsize
    flops = 2 * bp * (dp * hp + hp * hp + hp * cp)
    bytes_accessed = (
        itemsize(xp)
        + sum(itemsize(prepped[k]) for k in ("w1", "b1", "w2", "b2", "w3", "b3"))
        + bp * cp * jnp.dtype(out_dtype).itemsize
    )

    def resident(shape, buf_count):
        # Constant block index -> DMA'd once and kept resident in VMEM across
        # all grid steps.  buf_count=1 removes the useless second pipeline
        # buffer, halving the weight VMEM footprint (critical on v7x 64 MiB).
        if buf_count is not None:
            return pl.BlockSpec(shape, lambda i: (0, 0),
                                pipeline_mode=pl.Buffered(buffer_count=buf_count))
        return pl.BlockSpec(shape, lambda i: (0, 0))

    def run(buf_count):
        return pl.pallas_call(
            kernel,
            out_shape=jax.ShapeDtypeStruct((bp, cp), out_dtype),
            grid=grid,
            in_specs=[
                pl.BlockSpec((tb, dp), lambda i: (i, 0)),  # x: streamed/tiled
                resident((dp, hp), buf_count), resident((1, hp), buf_count),
                resident((hp, hp), buf_count), resident((1, hp), buf_count),
                resident((hp, cp), buf_count), resident((1, cp), buf_count),
            ],
            out_specs=pl.BlockSpec((tb, cp), lambda i: (i, 0)),
            compiler_params=pltpu.CompilerParams(
                dimension_semantics=("parallel",),
                vmem_limit_bytes=_vmem_limit_bytes(),
            ),
            cost_estimate=pl.CostEstimate(
                flops=flops, transcendentals=0, bytes_accessed=bytes_accessed),
        )(xp, prepped["w1"], prepped["b1"], prepped["w2"], prepped["b2"],
          prepped["w3"], prepped["b3"])

    if weight_buffer_count is None:
        out_padded = run(None)
    else:
        try:
            out_padded = run(weight_buffer_count)
        except Exception:
            # jax build without pipeline_mode / Buffered(1): fall back to the
            # default double-buffered specs (correct, just more VMEM).
            out_padded = run(None)

    return out_padded[:B, :n_cls]


def init_params(key, input_size, hidden_size, num_classes):
    """Deterministic init mimicking nn.Linear's U(-1/sqrt(fan_in), +)."""

    def linear(k, fan_in, fan_out):
        kw, kb = jax.random.split(k)
        bound = 1.0 / jnp.sqrt(fan_in)
        # Stored as [in, out] (transposed relative to PyTorch's [out, in]).
        w = jax.random.uniform(kw, (fan_in, fan_out), jnp.float32, -bound, bound)
        b = jax.random.uniform(kb, (1, fan_out), jnp.float32, -bound, bound)
        return w, b

    k1, k2, k3 = jax.random.split(key, 3)
    return {
        "l1": linear(k1, input_size, hidden_size),
        "l2": linear(k2, hidden_size, hidden_size),
        "l3": linear(k3, hidden_size, num_classes),
    }


if __name__ == "__main__":
    key = jax.random.PRNGKey(0)
    kx, kp = jax.random.split(key)

    # Small synthetic shapes (bag-of-words style input like the chatbot model).
    batch, input_size, hidden_size, num_classes = 8, 32, 32, 16

    x = jax.random.normal(kx, (batch, input_size), jnp.float32)
    params = init_params(kp, input_size, hidden_size, num_classes)

    # Pure-JAX reference.
    w1, b1 = params["l1"]; w2, b2 = params["l2"]; w3, b3 = params["l3"]
    ref = jnp.maximum(x @ w1 + b1, 0.0)
    ref = jnp.maximum(ref @ w2 + b2, 0.0)
    ref = ref @ w3 + b3

    # 1) f32-weight path (HIGHEST precision -> exact vs reference).
    prepped_f32 = prepare_params(params, weights_dtype=jnp.float32)
    out_f32 = jax.block_until_ready(neural_net_forward(x, prepped_f32))
    assert out_f32.shape == (batch, num_classes)
    assert jnp.allclose(out_f32, ref, atol=1e-5, rtol=1e-5)

    # 2) bf16-weight path (default / recommended on all generations).  The
    #    activations are also cast to bf16 for the matmuls; accumulation f32.
    prepped_bf16 = prepare_params(params)  # bf16 default
    out_bf16 = jax.block_until_ready(neural_net_forward(x, prepped_bf16))
    assert out_bf16.shape == (batch, num_classes)
    assert jnp.allclose(out_bf16, ref, atol=7e-2, rtol=7e-2)

    print("KERNEL_OK")
</pallas_src>

<mosaic_0001>
module attributes {stable_mosaic.version = 11 : i64} {
  func.func @mlp_kernel(%arg0: i32, %arg1: memref<8x32xf32, #tpu.memory_space<vmem>>, %arg2: memref<32x128xf32, #tpu.memory_space<vmem>>, %arg3: memref<1x128xf32, #tpu.memory_space<vmem>>, %arg4: memref<128x128xf32, #tpu.memory_space<vmem>>, %arg5: memref<1x128xf32, #tpu.memory_space<vmem>>, %arg6: memref<128x128xf32, #tpu.memory_space<vmem>>, %arg7: memref<1x128xf32, #tpu.memory_space<vmem>>, %arg8: memref<8x128xf32, #tpu.memory_space<vmem>>) attributes {dimension_semantics = [#tpu.dimension_semantics<parallel>], iteration_bounds = array<i64: 1>, scalar_prefetch = 0 : i64, scratch_operands = 0 : i64, tpu.core_type = #tpu.core_type<tc>, window_params = [{transform_indices = @transform_0, window_bounds = array<i64: 8, 32>}, {pipeline_mode = #tpu.pipeline_mode<synchronous>, transform_indices = @transform_1, window_bounds = array<i64: 32, 128>}, {pipeline_mode = #tpu.pipeline_mode<synchronous>, transform_indices = @transform_2, window_bounds = array<i64: 1, 128>}, {pipeline_mode = #tpu.pipeline_mode<synchronous>, transform_indices = @transform_3, window_bounds = array<i64: 128, 128>}, {pipeline_mode = #tpu.pipeline_mode<synchronous>, transform_indices = @transform_4, window_bounds = array<i64: 1, 128>}, {pipeline_mode = #tpu.pipeline_mode<synchronous>, transform_indices = @transform_5, window_bounds = array<i64: 128, 128>}, {pipeline_mode = #tpu.pipeline_mode<synchronous>, transform_indices = @transform_6, window_bounds = array<i64: 1, 128>}, {transform_indices = @transform_7, window_bounds = array<i64: 8, 128>}]} {
    %c0 = arith.constant 0 : index
    %c0_0 = arith.constant 0 : index
    %0 = vector.load %arg1[%c0, %c0_0] : memref<8x32xf32, #tpu.memory_space<vmem>>, vector<8x32xf32>
    %c0_1 = arith.constant 0 : index
    %c0_2 = arith.constant 0 : index
    %1 = vector.load %arg2[%c0_1, %c0_2] : memref<32x128xf32, #tpu.memory_space<vmem>>, vector<32x128xf32>
    %cst = arith.constant dense<0.000000e+00> : vector<8x128xf32>
    %2 = tpu.matmul %0, %1, %cst {dimension_numbers = #tpu.dot_dimension_numbers<[1], [0], [0], [1], [0, 0, 1, 1], [], []>, precision = #tpu.contract_precision<fp32>} : vector<8x32xf32>, vector<32x128xf32>, vector<8x128xf32> -> vector<8x128xf32>
    %c0_3 = arith.constant 0 : index
    %c0_4 = arith.constant 0 : index
    %3 = vector.load %arg3[%c0_3, %c0_4] : memref<1x128xf32, #tpu.memory_space<vmem>>, vector<1x128xf32>
    %4 = vector.broadcast %3 : vector<1x128xf32> to vector<8x128xf32>
    %5 = arith.addf %2, %4 : vector<8x128xf32>
    %cst_5 = arith.constant 0.000000e+00 : f32
    %6 = vector.broadcast %cst_5 : f32 to vector<8x128xf32>
    %7 = arith.maximumf %5, %6 : vector<8x128xf32>
    %c0_6 = arith.constant 0 : index
    %c0_7 = arith.constant 0 : index
    %8 = vector.load %arg4[%c0_6, %c0_7] : memref<128x128xf32, #tpu.memory_space<vmem>>, vector<128x128xf32>
    %cst_8 = arith.constant dense<0.000000e+00> : vector<8x128xf32>
    %9 = tpu.matmul %7, %8, %cst_8 {dimension_numbers = #tpu.dot_dimension_numbers<[1], [0], [0], [1], [0, 0, 1, 1], [], []>, precision = #tpu.contract_precision<fp32>} : vector<8x128xf32>, vector<128x128xf32>, vector<8x128xf32> -> vector<8x128xf32>
    %c0_9 = arith.constant 0 : index
    %c0_10 = arith.constant 0 : index
    %10 = vector.load %arg5[%c0_9, %c0_10] : memref<1x128xf32, #tpu.memory_space<vmem>>, vector<1x128xf32>
    %11 = vector.broadcast %10 : vector<1x128xf32> to vector<8x128xf32>
    %12 = arith.addf %9, %11 : vector<8x128xf32>
    %cst_11 = arith.constant 0.000000e+00 : f32
    %13 = vector.broadcast %cst_11 : f32 to vector<8x128xf32>
    %14 = arith.maximumf %12, %13 : vector<8x128xf32>
    %c0_12 = arith.constant 0 : index
    %c0_13 = arith.constant 0 : index
    %15 = vector.load %arg6[%c0_12, %c0_13] : memref<128x128xf32, #tpu.memory_space<vmem>>, vector<128x128xf32>
    %cst_14 = arith.constant dense<0.000000e+00> : vector<8x128xf32>
    %16 = tpu.matmul %14, %15, %cst_14 {dimension_numbers = #tpu.dot_dimension_numbers<[1], [0], [0], [1], [0, 0, 1, 1], [], []>, precision = #tpu.contract_precision<fp32>} : vector<8x128xf32>, vector<128x128xf32>, vector<8x128xf32> -> vector<8x128xf32>
    %c0_15 = arith.constant 0 : index
    %c0_16 = arith.constant 0 : index
    %17 = vector.load %arg7[%c0_15, %c0_16] : memref<1x128xf32, #tpu.memory_space<vmem>>, vector<1x128xf32>
    %18 = vector.broadcast %17 : vector<1x128xf32> to vector<8x128xf32>
    %19 = arith.addf %16, %18 : vector<8x128xf32>
    %c0_17 = arith.constant 0 : index
    %c0_18 = arith.constant 0 : index
    %20 = vector.load %arg8[%c0_17, %c0_18] : memref<8x128xf32, #tpu.memory_space<vmem>>, vector<8x128xf32>
    tpu.vector_store %arg8[%c0_17, %c0_18], %19 {strides = array<i32>} : memref<8x128xf32, #tpu.memory_space<vmem>>, vector<8x128xf32>,
    return
  }
  func.func @transform_0(%arg0: i32) -> (i32, i32) {
    %c0_i32 = arith.constant 0 : i32
    %c0_i32_0 = arith.constant 0 : i32
    return %arg0, %c0_i32 : i32, i32
  }
  func.func @transform_1(%arg0: i32) -> (i32, i32) {
    %c0_i32 = arith.constant 0 : i32
    %c0_i32_0 = arith.constant 0 : i32
    %c0_i32_1 = arith.constant 0 : i32
    return %c0_i32, %c0_i32_0 : i32, i32
  }
  func.func @transform_2(%arg0: i32) -> (i32, i32) {
    %c0_i32 = arith.constant 0 : i32
    %c0_i32_0 = arith.constant 0 : i32
    %c0_i32_1 = arith.constant 0 : i32
    return %c0_i32, %c0_i32_0 : i32, i32
  }
  func.func @transform_3(%arg0: i32) -> (i32, i32) {
    %c0_i32 = arith.constant 0 : i32
    %c0_i32_0 = arith.constant 0 : i32
    %c0_i32_1 = arith.constant 0 : i32
    return %c0_i32, %c0_i32_0 : i32, i32
  }
  func.func @transform_4(%arg0: i32) -> (i32, i32) {
    %c0_i32 = arith.constant 0 : i32
    %c0_i32_0 = arith.constant 0 : i32
    %c0_i32_1 = arith.constant 0 : i32
    return %c0_i32, %c0_i32_0 : i32, i32
  }
  func.func @transform_5(%arg0: i32) -> (i32, i32) {
    %c0_i32 = arith.constant 0 : i32
    %c0_i32_0 = arith.constant 0 : i32
    %c0_i32_1 = arith.constant 0 : i32
    return %c0_i32, %c0_i32_0 : i32, i32
  }
  func.func @transform_6(%arg0: i32) -> (i32, i32) {
    %c0_i32 = arith.constant 0 : i32
    %c0_i32_0 = arith.constant 0 : i32
    %c0_i32_1 = arith.constant 0 : i32
    return %c0_i32, %c0_i32_0 : i32, i32
  }
  func.func @transform_7(%arg0: i32) -> (i32, i32) {
    %c0_i32 = arith.constant 0 : i32
    %c0_i32_0 = arith.constant 0 : i32
    return %arg0, %c0_i32 : i32, i32
  }
}

module attributes {stable_mosaic.version = 11 : i64} {
  func.func @mlp_kernel(%arg0: i32, %arg1: memref<8x32xf32, #tpu.memory_space<vmem>>, %arg2: memref<32x128xf32, #tpu.memory_space<vmem>>, %arg3: memref<1x128xf32, #tpu.memory_space<vmem>>, %arg4: memref<128x128xf32, #tpu.memory_space<vmem>>, %arg5: memref<1x128xf32, #tpu.memory_space<vmem>>, %arg6: memref<128x128xf32, #tpu.memory_space<vmem>>, %arg7: memref<1x128xf32, #tpu.memory_space<vmem>>, %arg8: memref<8x128xf32, #tpu.memory_space<vmem>>) attributes {dimension_semantics = [#tpu.dimension_semantics<parallel>], iteration_bounds = array<i64: 1>, scalar_prefetch = 0 : i64, scratch_operands = 0 : i64, tpu.core_type = #tpu.core_type<tc>, window_params = [{transform_indices = @transform_0, window_bounds = array<i64: 8, 32>}, {pipeline_mode = #tpu.pipeline_mode<synchronous>, transform_indices = @transform_1, window_bounds = array<i64: 32, 128>}, {pipeline_mode = #tpu.pipeline_mode<synchronous>, transform_indices = @transform_2, window_bounds = array<i64: 1, 128>}, {pipeline_mode = #tpu.pipeline_mode<synchronous>, transform_indices = @transform_3, window_bounds = array<i64: 128, 128>}, {pipeline_mode = #tpu.pipeline_mode<synchronous>, transform_indices = @transform_4, window_bounds = array<i64: 1, 128>}, {pipeline_mode = #tpu.pipeline_mode<synchronous>, transform_indices = @transform_5, window_bounds = array<i64: 128, 128>}, {pipeline_mode = #tpu.pipeline_mode<synchronous>, transform_indices = @transform_6, window_bounds = array<i64: 1, 128>}, {transform_indices = @transform_7, window_bounds = array<i64: 8, 128>}]} {
    %c0 = arith.constant 0 : index
    %c0_0 = arith.constant 0 : index
    %0 = vector.load %arg1[%c0, %c0_0] : memref<8x32xf32, #tpu.memory_space<vmem>>, vector<8x32xf32>
    %c0_1 = arith.constant 0 : index
    %c0_2 = arith.constant 0 : index
    %1 = vector.load %arg2[%c0_1, %c0_2] : memref<32x128xf32, #tpu.memory_space<vmem>>, vector<32x128xf32>
    %cst = arith.constant dense<0.000000e+00> : vector<8x128xf32>
    %2 = tpu.matmul %0, %1, %cst {dimension_numbers = #tpu.dot_dimension_numbers<[1], [0], [0], [1], [0, 0, 1, 1], [], []>, precision = #tpu.contract_precision<fp32>} : vector<8x32xf32>, vector<32x128xf32>, vector<8x128xf32> -> vector<8x128xf32>
    %c0_3 = arith.constant 0 : index
    %c0_4 = arith.constant 0 : index
    %3 = vector.load %arg3[%c0_3, %c0_4] : memref<1x128xf32, #tpu.memory_space<vmem>>, vector<1x128xf32>
    %4 = vector.broadcast %3 : vector<1x128xf32> to vector<8x128xf32>
    %5 = arith.addf %2, %4 : vector<8x128xf32>
    %cst_5 = arith.constant 0.000000e+00 : f32
    %6 = vector.broadcast %cst_5 : f32 to vector<8x128xf32>
    %7 = arith.maximumf %5, %6 : vector<8x128xf32>
    %c0_6 = arith.constant 0 : index
    %c0_7 = arith.constant 0 : index
    %8 = vector.load %arg4[%c0_6, %c0_7] : memref<128x128xf32, #tpu.memory_space<vmem>>, vector<128x128xf32>
    %cst_8 = arith.constant dense<0.000000e+00> : vector<8x128xf32>
    %9 = tpu.matmul %7, %8, %cst_8 {dimension_numbers = #tpu.dot_dimension_numbers<[1], [0], [0], [1], [0, 0, 1, 1], [], []>, precision = #tpu.contract_precision<fp32>} : vector<8x128xf32>, vector<128x128xf32>, vector<8x128xf32> -> vector<8x128xf32>
    %c0_9 = arith.constant 0 : index
    %c0_10 = arith.constant 0 : index
    %10 = vector.load %arg5[%c0_9, %c0_10] : memref<1x128xf32, #tpu.memory_space<vmem>>, vector<1x128xf32>
    %11 = vector.broadcast %10 : vector<1x128xf32> to vector<8x128xf32>
    %12 = arith.addf %9, %11 : vector<8x128xf32>
    %cst_11 = arith.constant 0.000000e+00 : f32
    %13 = vector.broadcast %cst_11 : f32 to vector<8x128xf32>
    %14 = arith.maximumf %12, %13 : vector<8x128xf32>
    %c0_12 = arith.constant 0 : index
    %c0_13 = arith.constant 0 : index
    %15 = vector.load %arg6[%c0_12, %c0_13] : memref<128x128xf32, #tpu.memory_space<vmem>>, vector<128x128xf32>
    %cst_14 = arith.constant dense<0.000000e+00> : vector<8x128xf32>
    %16 = tpu.matmul %14, %15, %cst_14 {dimension_numbers = #tpu.dot_dimension_numbers<[1], [0], [0], [1], [0, 0, 1, 1], [], []>, precision = #tpu.contract_precision<fp32>} : vector<8x128xf32>, vector<128x128xf32>, vector<8x128xf32> -> vector<8x128xf32>
    %c0_15 = arith.constant 0 : index
    %c0_16 = arith.constant 0 : index
    %17 = vector.load %arg7[%c0_15, %c0_16] : memref<1x128xf32, #tpu.memory_space<vmem>>, vector<1x128xf32>
    %18 = vector.broadcast %17 : vector<1x128xf32> to vector<8x128xf32>
    %19 = arith.addf %16, %18 : vector<8x128xf32>
    %c0_17 = arith.constant 0 : index
    %c0_18 = arith.constant 0 : index
    %20 = vector.load %arg8[%c0_17, %c0_18] : memref<8x128xf32, #tpu.memory_space<vmem>>, vector<8x128xf32>
    tpu.vector_store %arg8[%c0_17, %c0_18], %19 {strides = array<i32>} : memref<8x128xf32, #tpu.memory_space<vmem>>, vector<8x128xf32>,
    return
  }
  func.func @transform_0(%arg0: i32) -> (i32, i32) {
    %c0_i32 = arith.constant 0 : i32
    %c0_i32_0 = arith.constant 0 : i32
    return %arg0, %c0_i32 : i32, i32
  }
  func.func @transform_1(%arg0: i32) -> (i32, i32) {
    %c0_i32 = arith.constant 0 : i32
    %c0_i32_0 = arith.constant 0 : i32
    %c0_i32_1 = arith.constant 0 : i32
    return %c0_i32, %c0_i32_0 : i32, i32
  }
  func.func @transform_2(%arg0: i32) -> (i32, i32) {
    %c0_i32 = arith.constant 0 : i32
    %c0_i32_0 = arith.constant 0 : i32
    %c0_i32_1 = arith.constant 0 : i32
    return %c0_i32, %c0_i32_0 : i32, i32
  }
  func.func @transform_3(%arg0: i32) -> (i32, i32) {
    %c0_i32 = arith.constant 0 : i32
    %c0_i32_0 = arith.constant 0 : i32
    %c0_i32_1 = arith.constant 0 : i32
    return %c0_i32, %c0_i32_0 : i32, i32
  }
  func.func @transform_4(%arg0: i32) -> (i32, i32) {
    %c0_i32 = arith.constant 0 : i32
    %c0_i32_0 = arith.constant 0 : i32
    %c0_i32_1 = arith.constant 0 : i32
    return %c0_i32, %c0_i32_0 : i32, i32
  }
  func.func @transform_5(%arg0: i32) -> (i32, i32) {
    %c0_i32 = arith.constant 0 : i32
    %c0_i32_0 = arith.constant 0 : i32
    %c0_i32_1 = arith.constant 0 : i32
    return %c0_i32, %c0_i32_0 : i32, i32
  }
  func.func @transform_6(%arg0: i32) -> (i32, i32) {
    %c0_i32 = arith.constant 0 : i32
    %c0_i32_0 = arith.constant 0 : i32
    %c0_i32_1 = arith.constant 0 : i32
    return %c0_i32, %c0_i32_0 : i32, i32
  }
  func.func @transform_7(%arg0: i32) -> (i32, i32) {
    %c0_i32 = arith.constant 0 : i32
    %c0_i32_0 = arith.constant 0 : i32
    return %arg0, %c0_i32 : i32, i32
  }
}

</mosaic_0001>

<bundles_post_ra>
// kernel: tpu_custom_call.1
= control target key start
LH: loop header
LB: loop body
LE: loop exit
PB: predicated region body
PF: predicated region fallthrough
CT: control target
= control target key end

     0   :  { %12 = vsyncpa [#allocation3], 0  ;;  %s1727_s0 = inlined_call_operand.hbm [shape: f32[8,32], index: 0, kind: input, shape index: {}]   ;;  %s1728_s1 = inlined_call_operand.hbm [shape: f32[32,128], index: 1, kind: input, shape index: {}]   ;;  %s1729_s2 = inlined_call_operand.vmem [shape: f32[1,128], index: 2, kind: input, shape index: {}]   ;;  %s1730_s3 = inlined_call_operand.hbm [shape: f32[128,128], index: 3, kind: input, shape index: {}]   ;;  %s1731_s4 = inlined_call_operand.vmem [shape: f32[1,128], index: 4, kind: input, shape index: {}]   ;;  %s1732_s5 = inlined_call_operand.hbm [shape: f32[128,128], index: 5, kind: input, shape index: {}]   ;;  %s1733_s6 = inlined_call_operand.vmem [shape: f32[1,128], index: 6, kind: input, shape index: {}]   ;;  %s1734_s7 = inlined_call_operand.hbm [shape: f32[8,128], index: 7, kind: output, shape index: {}]  }
   0x1   :  { %13 = vsyncpa [#allocation6], 0 }
   0x2   :  { %14 = vsyncpa [#allocation9], 0  ;;  %s31_s26 = sshll.u32 %s1728_s1, 4  ;;  %s32_s26 = int_to_ptr.hbm [resolvable:$true] %s31_s26 }
   0x3   :  { %15 = vsyncpa [#allocation4], 0  ;;  %s1168_s27 = smov [#allocation5]   ;;  %s21_s8 = sshll.u32 %s1727_s0, 4  ;;  %s22_s8 = int_to_ptr.hbm [resolvable:$true] %s21_s8 }
   0x4   :  { %s33_s28 = sshll.u32 %s1168_s27, 4  ;;  %s1169_s9 = smov 128   ;;  %s34_s28 = int_to_ptr.vmem [resolvable:$true] %s33_s28 }
   0x5   :  { %s1170_s10 = smov 8   ;;  %s1171_s11 = smov [#allocation2]  }
   0x6   :  { %39 = dma.hbm_to_vmem [thread:$0]  %s32_s26, 512, %s34_s28, [#allocation6], %s1169_s9, %s1169_s9, %s1170_s10  }
   0x7   :  { %s23_s12 = sshll.u32 %s1171_s11, 4  ;;  %s46_s15 = sshll.u32 %s1730_s3, 4  ;;  %s24_s12 = int_to_ptr.vmem [resolvable:$true] %s23_s12  ;;  %s47_s15 = int_to_ptr.hbm [resolvable:$true] %s46_s15 }
   0x8   :  { %26 = dma.hbm_to_vmem [thread:$0]  %s22_s8, 128, %s24_s12, [#allocation3]  }
   0x9   :  { %s61_s17 = sshll.u32 %s1732_s5, 4  ;;  %s1172_s18 = smov [#allocation7]   ;;  %s62_s17 = int_to_ptr.hbm [resolvable:$true] %s61_s17 }
   0xa   :  { %s48_s19 = sshll.u32 %s1172_s18, 4  ;;  %s1173_s0 = smov [#allocation8]   ;;  %s49_s19 = int_to_ptr.vmem [resolvable:$true] %s48_s19 }
   0xb   :  { %54 = dma.hbm_to_vmem [thread:$0]  %s47_s15, 2048, %s49_s19, [#allocation6], %s1169_s9, %s1169_s9, %s1170_s10  }
   0xc   :  { %s63_s20 = sshll.u32 %s1173_s0, 4  ;;  %s64_s20 = int_to_ptr.vmem [resolvable:$true] %s63_s20 }
   0xd   :  { %69 = dma.hbm_to_vmem [thread:$0]  %s62_s17, 2048, %s64_s20, [#allocation9], %s1169_s9, %s1169_s9, %s1170_s10  }
   0xe   :  { %1160 = dma.done.wait [#allocation3], 128  }
   0xf   :  { %1161 = vsyncadd [#allocation3], 4294967168 }
  0x10   :  { %1162 = dma.done.wait [#allocation6], 2560  }
  0x11   :  { %1163 = vsyncadd [#allocation6], 4294964736 }
  0x12   :  { %1164 = dma.done.wait [#allocation9], 2048  }
  0x13   :  { %1165 = vsyncadd [#allocation9], 4294965248  ;;  %vm97_vm0 = vcmask 261120   ;;  %v92_v0 = vld [vmem:[#allocation5 + $0x18] sm:$0xff]  ;;  %v91_v1 = vld [vmem:[#allocation5 + $0x10] sm:$0xff]  ;;  %s1174_s23 = smov [#allocation10]  }
  0x14   :  { %v90_v2 = vld [vmem:[#allocation5 + $0x8] sm:$0xff]  ;;  %v1227_v3 = vand.u32 4294901760, %v92_v0  ;;  %v1229_v4 = vand.u32 4294901760, %v91_v1  ;;  %v89_v6 = vld [vmem:[#allocation5] sm:$0xff]  ;;  %v88_v7 = vld [vmem:[#allocation2] sm:$0xff]  ;;  %s1016_s24 = sshll.u32 %s1174_s23, 4  ;;  %s1017_s24 = int_to_ptr.vmem [resolvable:$true] %s1016_s24 }
  0x15   :  { %v1231_v5 = vand.u32 4294901760, %v90_v2  ;;  %v302_v8 = vld [vmem:[#allocation7 + $0x78] sm:$0xff]  ;;  %v1233_v9 = vand.u32 4294901760, %v89_v6  ;;  %v99_v10 = vsel %vm97_vm0, %v88_v7, 0  ;;  %v301_v12 = vld [vmem:[#allocation7 + $0x70] sm:$0xff]  ;;  %v300_v13 = vld [vmem:[#allocation7 + $0x68] sm:$0xff] }
  0x16   :  { %v1235_v11 = vand.u32 4294901760, %v302_v8  ;;  %v143_v14 = vsub.f32 %v92_v0, %v1227_v3  ;;  %114 = vmatpush.msra.mxu0 %v1227_v3  ;;  %v1240_v15 = vsub.f32 %v91_v1, %v1229_v4  ;;  %214 = vmatpush.msra.mxu3 %v1227_v3  ;;  %v1246_v17 = vand.u32 4294901760, %v99_v10  ;;  %v299_v38 = vld [vmem:[#allocation7 + $0x60] sm:$0xff]  ;;  %v298_v39 = vld [vmem:[#allocation7 + $0x58] sm:$0xff]  ;;  %v297_v40 = vld [vmem:[#allocation7 + $0x50] sm:$0xff]  ;;  %s1018_s27 = sshll.u32 %s1734_s7, 4  ;;  %s1019_s27 = int_to_ptr.hbm [resolvable:$true] %s1018_s27 }
  0x17   :  { %v1244_v16 = vsub.f32 %v90_v2, %v1231_v5  ;;  %v1249_v18 = vsub.f32 %v89_v6, %v1233_v9  ;;  %v1254_v20 = vand.u32 4294901760, %v301_v12  ;;  %v1256_v21 = vand.u32 4294901760, %v300_v13  ;;  %v296_v44 = vld [vmem:[#allocation7 + $0x48] sm:$0xff]  ;;  %v295_v45 = vld [vmem:[#allocation7 + $0x40] sm:$0xff]  ;;  %v294_v50 = vld [vmem:[#allocation7 + $0x38] sm:$0xff] }
  0x18   :  { %v1252_v19 = vsub.f32 %v302_v8, %v1235_v11  ;;  %185 = vmatpush.msra.mxu2 %v143_v14  ;;  %116 = vmatpush.msra.mxu0 %v1229_v4  ;;  %v144_v22 = vand.u32 4294901760, %v143_v14  ;;  %v150_v23 = vand.u32 4294901760, %v1240_v15  ;;  %v122_v24 = vsub.f32 %v99_v10, %v1246_v17  ;;  %v293_v55 = vld [vmem:[#allocation7 + $0x30] sm:$0xff]  ;;  %v292_v60 = vld [vmem:[#allocation7 + $0x28] sm:$0xff] }
  0x19   :  { %v156_v25 = vand.u32 4294901760, %v1244_v16  ;;  %216 = vmatpush.msra.mxu3 %v1229_v4  ;;  %v162_v26 = vand.u32 4294901760, %v1249_v18  ;;  %v1266_v28 = vsub.f32 %v301_v12, %v1254_v20  ;;  %v1269_v29 = vsub.f32 %v300_v13, %v1256_v21 }
  0x1a   :  { %v350_v27 = vand.u32 4294901760, %v1252_v19  ;;  %188 = vmatpush.msra.mxu2 %v1240_v15  ;;  %v145_v30 = vsub.f32 %v143_v14, %v144_v22  ;;  %118 = vmatpush.msra.mxu0 %v1231_v5  ;;  %v151_v31 = vsub.f32 %v1240_v15, %v150_v23  ;;  %v123_v33 = vand.u32 4294901760, %v122_v24 }
  0x1b   :  { %v157_v32 = vsub.f32 %v1244_v16, %v156_v25  ;;  %218 = vmatpush.msra.mxu3 %v1231_v5  ;;  %v163_v34 = vsub.f32 %v1249_v18, %v162_v26  ;;  %v356_v36 = vand.u32 4294901760, %v1266_v28  ;;  %v362_v37 = vand.u32 4294901760, %v1269_v29 }
  0x1c   :  { %v351_v35 = vsub.f32 %v1252_v19, %v350_v27  ;;  %v146_v41 = vand.u32 4294901760, %v145_v30  ;;  %191 = vmatpush.msra.mxu2 %v1244_v16  ;;  %v152_v42 = vand.u32 4294901760, %v151_v31  ;;  %120 = vmatpush.msra.mxu0 %v1233_v9  ;;  %v124_v43 = vsub.f32 %v122_v24, %v123_v33  ;;  %v291_v30 = vld [vmem:[#allocation7 + $0x20] sm:$0xff]  ;;  %v290_v31 = vld [vmem:[#allocation7 + $0x18] sm:$0xff] }
  0x1d   :  { %v158_v46 = vand.u32 4294901760, %v157_v32  ;;  %220 = vmatpush.msra.mxu3 %v1233_v9  ;;  %v357_v48 = vsub.f32 %v1266_v28, %v356_v36  ;;  %v363_v49 = vsub.f32 %v1269_v29, %v362_v37  ;;  %v1296_v52 = vand.u32 4294901760, %v299_v38 }
  0x1e   :  { %243 = vmatpush.msrb.mxu0 %v144_v22  ;;  %v352_v47 = vand.u32 4294901760, %v351_v35  ;;  %147 = vmatpush.msra.mxu1 %v146_v41  ;;  %v125_v51 = vand.u32 4294901760, %v124_v43  ;;  %v1298_v53 = vand.u32 4294901760, %v298_v39  ;;  %v1300_v54 = vand.u32 4294901760, %v297_v40 }
  0x1f   :  { %194 = vmatpush.msra.mxu2 %v1249_v18  ;;  %224 = vmatmul.f32.vlgmr.msra.gmra.mxu3 %v123_v33  ;;  %v164_v56 = vand.u32 4294901760, %v163_v34  ;;  %v358_v57 = vand.u32 4294901760, %v357_v48  ;;  %v1302_v58 = vand.u32 4294901760, %v296_v44  ;;  %v1304_v59 = vand.u32 4294901760, %v295_v45  ;;  %v289_v34 = vld [vmem:[#allocation7 + $0x10] sm:$0xff] }
  0x20   :  { %197 = vmatmul.f32.vlgmr.msra.gmra.mxu2 %v122_v24  ;;  %153 = vmatpush.msra.mxu1 %v152_v42  ;;  %v1307_v61 = vsub.f32 %v299_v38, %v1296_v52  ;;  %v1310_v62 = vsub.f32 %v298_v39, %v1298_v53  ;;  %v1313_v63 = vsub.f32 %v297_v40, %v1300_v54  ;;  %v1315_v0 = vand.u32 4294901760, %v294_v50  ;;  %v288_v40 = vld [vmem:[#allocation7 + $0x8] sm:$0xff] }
  0x21   :  { %126 = vmatmul.f32.vlgmr.msra.gmra.mxu0 %v125_v51  ;;  %353 = vmatpush.msrb.mxu3 %v352_v47  ;;  %v364_v1 = vand.u32 4294901760, %v363_v49  ;;  %v1318_v2 = vsub.f32 %v296_v44, %v1302_v58  ;;  %v1321_v6 = vsub.f32 %v295_v45, %v1304_v59  ;;  %v1323_v7 = vand.u32 4294901760, %v293_v55  ;;  %v287_v45 = vld [vmem:[#allocation7] sm:$0xff] }
  0x22   :  { %247 = vmatpush.msrb.mxu0 %v150_v23  ;;  %159 = vmatpush.msra.mxu1 %v158_v46  ;;  %v368_v8 = vand.u32 4294901760, %v1307_v61  ;;  %v374_v10 = vand.u32 4294901760, %v1310_v62  ;;  %v380_v12 = vand.u32 4294901760, %v1313_v63  ;;  %v1329_v13 = vand.u32 4294901760, %v292_v60 }
  0x23   :  { %308 = vmatpush.msrb.mxu2 %v1235_v11  ;;  %359 = vmatpush.msrb.mxu3 %v358_v57  ;;  %v386_v14 = vand.u32 4294901760, %v1318_v2  ;;  %v1335_v15 = vsub.f32 %v294_v50, %v1315_v0  ;;  %v392_v16 = vand.u32 4294901760, %v1321_v6  ;;  %v1369_v38 = vand.u32 4294901760, %v291_v30 }
  0x24   :  { %251 = vmatpush.msrb.mxu0 %v156_v25  ;;  %165 = vmatpush.msra.mxu1 %v164_v56  ;;  %v369_v22 = vsub.f32 %v1307_v61, %v368_v8  ;;  %v375_v23 = vsub.f32 %v1310_v62, %v374_v10  ;;  %v381_v24 = vsub.f32 %v1313_v63, %v380_v12  ;;  %v1371_v39 = vand.u32 4294901760, %v290_v31 }
  0x25   :  { %310 = vmatpush.msrb.mxu2 %v1254_v20  ;;  %167 = vmatmul.f32.vlgmr.msra.gmra.mxu1 %v1246_v17  ;;  %v1352_v25 = vsub.f32 %v293_v55, %v1323_v7  ;;  %v1356_v33 = vsub.f32 %v292_v60, %v1329_v13  ;;  %v387_v18 = vsub.f32 %v1318_v2, %v386_v14  ;;  %v1375_v43 = vand.u32 4294901760, %v289_v34 }
  0x26   :  { %255 = vmatpush.msrb.mxu0 %v162_v26  ;;  %274 = vmatpush.msrb.mxu1 %v1227_v3  ;;  %v370_v32 = vand.u32 4294901760, %v369_v22  ;;  %v376_v35 = vand.u32 4294901760, %v375_v23  ;;  %v398_v26 = vand.u32 4294901760, %v1335_v15  ;;  %v393_v3 = vsub.f32 %v1321_v6, %v392_v16 }
  0x27   :  { %365 = vmatpush.msrb.mxu3 %v364_v1  ;;  %312 = vmatpush.msrb.mxu2 %v1256_v21  ;;  %v382_v41 = vand.u32 4294901760, %v381_v24  ;;  %v404_v42 = vand.u32 4294901760, %v1352_v25  ;;  %v1380_v44 = vsub.f32 %v291_v30, %v1369_v38  ;;  %v388_v46 = vand.u32 4294901760, %v387_v18 }
  0x28   :  { %451 = vmatpush.msra.mxu0 %v1252_v19  ;;  %276 = vmatpush.msrb.mxu1 %v1229_v4  ;;  %v410_v4 = vand.u32 4294901760, %v1356_v33  ;;  %v399_v47 = vsub.f32 %v1335_v15, %v398_v26  ;;  %v1388_v48 = vsub.f32 %v290_v31, %v1371_v39  ;;  %v394_v49 = vand.u32 4294901760, %v393_v3 }
  0x29   :  { %257 = vmatmul.f32.vlgmr.msrb.gmra.mxu0 %v1246_v17  ;;  %371 = vmatpush.msrb.mxu3 %v370_v32  ;;  %v405_v50 = vsub.f32 %v1352_v25, %v404_v42  ;;  %v416_v51 = vand.u32 4294901760, %v1380_v44  ;;  %v1400_v55 = vsub.f32 %v289_v34, %v1375_v43  ;;  %v1402_v56 = vand.u32 4294901760, %v287_v45 }
  0x2a   :  { %314 = vmatpush.msrb.mxu2 %v1296_v52  ;;  %278 = vmatpush.msrb.mxu1 %v1231_v5  ;;  %v1390_v5 = vand.u32 4294901760, %v288_v40  ;;  %v422_v57 = vand.u32 4294901760, %v1388_v48 }
  0x2b   :  { %454 = vmatpush.msra.mxu0 %v1266_v28  ;;  %377 = vmatpush.msrb.mxu3 %v376_v35  ;;  %v406_v1 = vand.u32 4294901760, %v405_v50  ;;  %v417_v22 = vsub.f32 %v1380_v44, %v416_v51  ;;  %v428_v23 = vand.u32 4294901760, %v1400_v55  ;;  %v1421_v24 = vsub.f32 %v287_v45, %v1402_v56  ;;  %v662_v28 = vld [vmem:[#allocation8 + $0x68] sm:$0xff] }
  0x2c   :  { %316 = vmatpush.msrb.mxu2 %v1298_v53  ;;  %280 = vmatpush.msrb.mxu1 %v1233_v9  ;;  %v400_v9 = vand.u32 4294901760, %v399_v47  ;;  %v1411_v60 = vsub.f32 %v288_v40, %v1390_v5  ;;  %v423_v31 = vsub.f32 %v1388_v48, %v422_v57 }
  0x2d   :  { %457 = vmatpush.msra.mxu0 %v1269_v29  ;;  %282 = vmatmul.f32.vlgmr.msrb.gmra.mxu1 %v1246_v17  ;;  %v411_v17 = vsub.f32 %v1356_v33, %v410_v4  ;;  %v418_v34 = vand.u32 4294901760, %v417_v22  ;;  %v429_v35 = vsub.f32 %v1400_v55, %v428_v23  ;;  %v440_v18 = vand.u32 4294901760, %v1421_v24 }
  0x2e   :  { %383 = vmatpush.msrb.mxu3 %v382_v41  ;;  %318 = vmatpush.msrb.mxu2 %v1300_v54  ;;  %v434_v32 = vand.u32 4294901760, %v1411_v60  ;;  %v424_v3 = vand.u32 4294901760, %v423_v31 }
  0x2f   :  { %504 = vmatpush.msra.mxu1 %v1235_v11  ;;  %460 = vmatpush.msra.mxu0 %v1307_v61  ;;  %v412_v30 = vand.u32 4294901760, %v411_v17  ;;  %v430_v41 = vand.u32 4294901760, %v429_v35  ;;  %v441_v45 = vsub.f32 %v1421_v24, %v440_v18 }
  0x30   :  { %389 = vmatpush.msrb.mxu3 %v388_v46  ;;  %320 = vmatpush.msrb.mxu2 %v1302_v58  ;;  %v435_v40 = vsub.f32 %v1411_v60, %v434_v32 }
  0x31   :  { %506 = vmatpush.msra.mxu1 %v1254_v20  ;;  %463 = vmatpush.msra.mxu0 %v1310_v62  ;;  %v442_v47 = vand.u32 4294901760, %v441_v45  ;;  %v652_v45 = vld [vmem:[#allocation8 + $0x18] sm:$0xff] }
  0x32   :  { %395 = vmatpush.msrb.mxu3 %v394_v49  ;;  %322 = vmatpush.msrb.mxu2 %v1304_v59  ;;  %v436_v46 = vand.u32 4294901760, %v435_v40 }
  0x33   :  { %508 = vmatpush.msra.mxu1 %v1256_v21  ;;  %466 = vmatpush.msra.mxu0 %v1313_v63 }
  0x34   :  { %401 = vmatpush.msrb.mxu3 %v400_v9  ;;  %324 = vmatpush.msrb.mxu2 %v1315_v0  ;;  %v655_v9 = vld [vmem:[#allocation8 + $0x30] sm:$0xff] }
  0x35   :  { %510 = vmatpush.msra.mxu1 %v1296_v52  ;;  %469 = vmatpush.msra.mxu0 %v1318_v2  ;;  %v658_v2 = vld [vmem:[#allocation8 + $0x48] sm:$0xff]  ;;  %v1589_v35 = vand.u32 4294901760, %v655_v9 }
  0x36   :  { %407 = vmatpush.msrb.mxu3 %v406_v1  ;;  %326 = vmatpush.msrb.mxu2 %v1323_v7  ;;  %v654_v1 = vld [vmem:[#allocation8 + $0x28] sm:$0xff] }
  0x37   :  { %512 = vmatpush.msra.mxu1 %v1298_v53  ;;  %472 = vmatpush.msra.mxu0 %v1321_v6 }
  0x38   :  { %413 = vmatpush.msrb.mxu3 %v412_v30  ;;  %328 = vmatpush.msrb.mxu2 %v1329_v13  ;;  %v653_v30 = vld [vmem:[#allocation8 + $0x20] sm:$0xff] }
  0x39   :  { %514 = vmatpush.msra.mxu1 %v1300_v54  ;;  %475 = vmatpush.msra.mxu0 %v1335_v15 }
  0x3a   :  { %419 = vmatpush.msrb.mxu3 %v418_v34  ;;  %330 = vmatpush.msrb.mxu2 %v1369_v38 }
  0x3b   :  { %516 = vmatpush.msra.mxu1 %v1302_v58  ;;  %478 = vmatpush.msra.mxu0 %v1352_v25 }
  0x3c   :  { %425 = vmatpush.msrb.mxu3 %v424_v3  ;;  %332 = vmatpush.msrb.mxu2 %v1371_v39 }
  0x3d   :  { %518 = vmatpush.msra.mxu1 %v1304_v59  ;;  %481 = vmatpush.msra.mxu0 %v1356_v33 }
  0x3e   :  { %431 = vmatpush.msrb.mxu3 %v430_v41  ;;  %334 = vmatpush.msrb.mxu2 %v1375_v43  ;;  %v1594_v41 = vand.u32 4294901760, %v654_v1 }
  0x3f   :  { %520 = vmatpush.msra.mxu1 %v1315_v0  ;;  %484 = vmatpush.msra.mxu0 %v1380_v44 }
  0x40   :  { %437 = vmatpush.msrb.mxu3 %v436_v46  ;;  %336 = vmatpush.msrb.mxu2 %v1390_v5 }
  0x41   :  { %522 = vmatpush.msra.mxu1 %v1323_v7  ;;  %487 = vmatpush.msra.mxu0 %v1388_v48 }
  0x42   :  { %443 = vmatpush.msrb.mxu3 %v442_v47  ;;  %338 = vmatpush.msrb.mxu2 %v1402_v56 }
  0x43   :  { %524 = vmatpush.msra.mxu1 %v1329_v13  ;;  %490 = vmatpush.msra.mxu0 %v1400_v55  ;;  %v657_v55 = vld [vmem:[#allocation8 + $0x40] sm:$0xff] }
  0x44   :  { %612 = vmatpush.msra.mxu3 %v1235_v11  ;;  %545 = vmatpush.msra.mxu2 %v350_v27  ;;  %v1037_v11 = vld [vmem:[%s1729_s2] ss:$0 sm:$0xff]  ;;  %v663_v27 = vld [vmem:[#allocation8 + $0x70] sm:$0xff] }
  0x45   :  { %526 = vmatpush.msra.mxu1 %v1369_v38  ;;  %493 = vmatpush.msra.mxu0 %v1411_v60 }
  0x46   :  { %614 = vmatpush.msra.mxu3 %v1254_v20  ;;  %549 = vmatpush.msra.mxu2 %v356_v36 }
  0x47   :  { %528 = vmatpush.msra.mxu1 %v1371_v39  ;;  %496 = vmatpush.msra.mxu0 %v1421_v24 }
  0x48   :  { %616 = vmatpush.msra.mxu3 %v1256_v21  ;;  %553 = vmatpush.msra.mxu2 %v362_v37  ;;  %v664_v21 = vld [vmem:[#allocation8 + $0x78] sm:$0xff] }
  0x49   :  { %530 = vmatpush.msra.mxu1 %v1375_v43  ;;  %v1523_v37 = vand.u32 4294901760, %v664_v21 }
  0x4a   :  { %618 = vmatpush.msra.mxu3 %v1296_v52  ;;  %557 = vmatpush.msra.mxu2 %v368_v8  ;;  %v1525_v52 = vand.u32 4294901760, %v663_v27 }
  0x4b   :  { %532 = vmatpush.msra.mxu1 %v1390_v5  ;;  %670 = vmatpush.msrb.mxu0 %v1523_v37 }
  0x4c   :  { %620 = vmatpush.msra.mxu3 %v1298_v53  ;;  %561 = vmatpush.msra.mxu2 %v374_v10  ;;  %v1527_v53 = vand.u32 4294901760, %v662_v28  ;;  %v1539_v8 = vsub.f32 %v663_v27, %v1525_v52 }
  0x4d   :  { %534 = vmatpush.msra.mxu1 %v1402_v56  ;;  %672 = vmatpush.msrb.mxu0 %v1525_v52 }
  0x4e   :  { %622 = vmatpush.msra.mxu3 %v1300_v54  ;;  %565 = vmatpush.msra.mxu2 %v380_v12  ;;  %v661_v54 = vld [vmem:[#allocation8 + $0x60] sm:$0xff]  ;;  %v1542_v10 = vsub.f32 %v662_v28, %v1527_v53  ;;  %v1545_v12 = vand.u32 4294901760, %v658_v2 }
  0x4f   :  { %v1529_v62 = vand.u32 4294901760, %v661_v54  ;;  %674 = vmatpush.msrb.mxu0 %v1527_v53 }
  0x50   :  { %624 = vmatpush.msra.mxu3 %v1302_v58  ;;  %569 = vmatpush.msra.mxu2 %v386_v14  ;;  %v660_v58 = vld [vmem:[#allocation8 + $0x58] sm:$0xff] }
  0x51   :  { %v1531_v63 = vand.u32 4294901760, %v660_v58  ;;  %v1548_v14 = vsub.f32 %v661_v54, %v1529_v62  ;;  %676 = vmatpush.msrb.mxu0 %v1529_v62  ;;  %v1617_v54 = vand.u32 4294901760, %v652_v45 }
  0x52   :  { %626 = vmatpush.msra.mxu3 %v1304_v59  ;;  %573 = vmatpush.msra.mxu2 %v392_v16  ;;  %v659_v59 = vld [vmem:[#allocation8 + $0x50] sm:$0xff] }
  0x53   :  { %v1551_v15 = vsub.f32 %v660_v58, %v1531_v63  ;;  %678 = vmatpush.msrb.mxu0 %v1531_v63 }
  0x54   :  { %628 = vmatpush.msra.mxu3 %v1315_v0  ;;  %577 = vmatpush.msra.mxu2 %v398_v26  ;;  %v1533_v0 = vand.u32 4294901760, %v659_v59  ;;  %v718_v26 = vand.u32 4294901760, %v1539_v8 }
  0x56   :  { %630 = vmatpush.msra.mxu3 %v1323_v7  ;;  %581 = vmatpush.msra.mxu2 %v404_v42  ;;  %v1536_v7 = vsub.f32 %v664_v21, %v1523_v37  ;;  %v1554_v16 = vsub.f32 %v659_v59, %v1533_v0  ;;  %v730_v42 = vand.u32 4294901760, %v1548_v14  ;;  %v719_v48 = vsub.f32 %v1539_v8, %v718_v26 }
  0x57   :  { %680 = vmatpush.msrb.mxu0 %v1533_v0 }
  0x58   :  { %632 = vmatpush.msra.mxu3 %v1329_v13  ;;  %585 = vmatpush.msra.mxu2 %v410_v4  ;;  %v712_v33 = vand.u32 4294901760, %v1536_v7  ;;  %v1563_v4 = vsub.f32 %v658_v2, %v1545_v12  ;;  %v731_v50 = vsub.f32 %v1548_v14, %v730_v42  ;;  %v720_v60 = vand.u32 4294901760, %v719_v48 }
  0x59   :  { %682 = vmatpush.msrb.mxu0 %v1545_v12  ;;  %v1634_v48 = vsub.f32 %v652_v45, %v1617_v54 }
  0x5a   :  { %634 = vmatpush.msra.mxu3 %v1369_v38  ;;  %589 = vmatpush.msra.mxu2 %v416_v51  ;;  %v724_v38 = vand.u32 4294901760, %v1542_v10  ;;  %v713_v44 = vsub.f32 %v1536_v7, %v712_v33  ;;  %v742_v51 = vand.u32 4294901760, %v1554_v16  ;;  %v748_v24 = vand.u32 4294901760, %v1563_v4 }
  0x5b   :  { %v732_v3 = vand.u32 4294901760, %v731_v50 }
  0x5c   :  { %636 = vmatpush.msra.mxu3 %v1371_v39  ;;  %593 = vmatpush.msra.mxu2 %v422_v57  ;;  %v714_v57 = vand.u32 4294901760, %v713_v44  ;;  %v743_v40 = vsub.f32 %v1554_v16, %v742_v51  ;;  %v749_v27 = vsub.f32 %v1563_v4, %v748_v24 }
  0x5e   :  { %638 = vmatpush.msra.mxu3 %v1375_v43  ;;  %597 = vmatpush.msra.mxu2 %v428_v23  ;;  %v736_v43 = vand.u32 4294901760, %v1551_v15  ;;  %v744_v59 = vand.u32 4294901760, %v743_v40  ;;  %v650_v40 = vld [vmem:[#allocation8 + $0x8] sm:$0xff] }
  0x5f   :  { %715 = vmatpush.msrb.mxu1 %v714_v57  ;;  %v784_v57 = vand.u32 4294901760, %v1634_v48 }
  0x60   :  { %640 = vmatpush.msra.mxu3 %v1390_v5  ;;  %601 = vmatpush.msra.mxu2 %v434_v32  ;;  %v725_v5 = vsub.f32 %v1542_v10, %v724_v38  ;;  %v737_v23 = vsub.f32 %v1551_v15, %v736_v43  ;;  %v1584_v32 = vand.u32 4294901760, %v657_v55 }
  0x61   :  { %721 = vmatpush.msrb.mxu1 %v720_v60 }
  0x62   :  { %642 = vmatpush.msra.mxu3 %v1402_v56  ;;  %605 = vmatpush.msra.mxu2 %v440_v18  ;;  %v656_v56 = vld [vmem:[#allocation8 + $0x38] sm:$0xff]  ;;  %v726_v31 = vand.u32 4294901760, %v725_v5  ;;  %v1597_v46 = vsub.f32 %v657_v55, %v1584_v32  ;;  %v738_v21 = vand.u32 4294901760, %v737_v23  ;;  %v785_v23 = vsub.f32 %v1634_v48, %v784_v57 }
  0x63   :  { %v1587_v34 = vand.u32 4294901760, %v656_v56  ;;  %684 = vmatpush.msrb.mxu0 %v1584_v32 }
  0x64   :  { %727 = vmatpush.msrb.mxu1 %v726_v31  ;;  %v754_v28 = vand.u32 4294901760, %v1597_v46  ;;  %v786_v31 = vand.u32 4294901760, %v785_v23 }
  0x65   :  { %v1600_v47 = vsub.f32 %v656_v56, %v1587_v34  ;;  %686 = vmatpush.msrb.mxu0 %v1587_v34 }
  0x66   :  { %733 = vmatpush.msrb.mxu1 %v732_v3 }
  0x67   :  { %688 = vmatpush.msrb.mxu0 %v1589_v35 }
  0x68   :  { %739 = vmatpush.msrb.mxu1 %v738_v21  ;;  %v649_v21 = vld [vmem:[#allocation8] sm:$0xff] }
  0x69   :  { %690 = vmatpush.msrb.mxu0 %v1594_v41 }
  0x6a   :  { %745 = vmatpush.msrb.mxu1 %v744_v59  ;;  %v699_v59 = vand.u32 4294901760, %v649_v21 }
  0x9e   :  { %v127_v19 = vpop.f32.mrf.mxu0 }
  0x9f   :  { %v128_v20 = vadd.f32 %v1037_v11, %v127_v19  ;;  %v1604_v11 = vsub.f32 %v655_v9, %v1589_v35  ;;  %v1606_v19 = vand.u32 4294901760, %v653_v30 }
  0xa1   :  { %v766_v2 = vand.u32 4294901760, %v1604_v11  ;;  %692 = vmatpush.msrb.mxu0 %v1606_v19 }
  0xa2   :  { %v168_v29 = vpop.f32.mrf.mxu1  ;;  %v225_v6 = vpop.f32.mrf.mxu3 }
  0xa3   :  { %v198_v36 = vpop.f32.mrf.mxu2  ;;  %v169_v61 = vadd.f32 %v168_v29, %v128_v20  ;;  %v760_v29 = vand.u32 4294901760, %v1600_v47  ;;  %v767_v50 = vsub.f32 %v1604_v11, %v766_v2  ;;  %694 = vmatpush.msrb.mxu0 %v1617_v54 }
  0xa5   :  { %v199_v13 = vadd.f32 %v198_v36, %v169_v61  ;;  %v1615_v36 = vsub.f32 %v654_v1, %v1594_v41  ;;  %v755_v61 = vsub.f32 %v1597_v46, %v754_v28  ;;  %v768_v60 = vand.u32 4294901760, %v767_v50 }
  0xa6   :  { %v258_v25 = vpop.f32.mrf.mxu0 }
  0xa7   :  { %v226_v39 = vadd.f32 %v225_v6, %v199_v13  ;;  %v1625_v6 = vsub.f32 %v653_v30, %v1606_v19  ;;  %v772_v44 = vand.u32 4294901760, %v1615_v36 }
  0xa9   :  { %v259_v49 = vadd.f32 %v258_v25, %v226_v39  ;;  %v750_v25 = vand.u32 4294901760, %v749_v27  ;;  %v761_v39 = vsub.f32 %v1600_v47, %v760_v29  ;;  %v778_v55 = vand.u32 4294901760, %v1625_v6 }
  0xaa   :  { %v283_v17 = vpop.f32.mrf.mxu1 }
  0xab   :  { %v284_v22 = vadd.f32 %v283_v17, %v259_v49  ;;  %v756_v49 = vand.u32 4294901760, %v755_v61  ;;  %751 = vmatpush.msrb.mxu1 %v750_v25  ;;  %v762_v9 = vand.u32 4294901760, %v761_v39  ;;  %v773_v17 = vsub.f32 %v1615_v36, %v772_v44 }
  0xac   :  { %v779_v1 = vsub.f32 %v1625_v6, %v778_v55  ;;  %v801_v25 = vsub.f32 %v649_v21, %v699_v59 }
  0xad   :  { %v286_v18 = vmax.f32 %v284_v22, 0.0  ;;  %757 = vmatpush.msrb.mxu1 %v756_v49  ;;  %v774_v22 = vand.u32 4294901760, %v773_v17 }
  0xae   :  { %v780_v30 = vand.u32 4294901760, %v779_v1  ;;  %v802_v49 = vand.u32 4294901760, %v801_v25 }
  0xaf   :  { %v339_v20 = vand.u32 4294901760, %v286_v18  ;;  %763 = vmatpush.msrb.mxu1 %v762_v9 }
  0xb1   :  { %v340_v58 = vsub.f32 %v286_v18, %v339_v20  ;;  %445 = vmatmul.f32.vlgmr.msrb.gmra.mxu3 %v339_v20  ;;  %769 = vmatpush.msrb.mxu1 %v768_v60  ;;  %v651_v18 = vld [vmem:[#allocation8 + $0x10] sm:$0xff] }
  0xb2   :  { %866 = vmatpush.msrb.mxu3 %v1523_v37  ;;  %v695_v3 = vand.u32 4294901760, %v651_v18 }
  0xb3   :  { %499 = vmatmul.f32.vlgmr.msra.gmra.mxu0 %v340_v58  ;;  %v341_v13 = vand.u32 4294901760, %v340_v58  ;;  %775 = vmatpush.msrb.mxu1 %v774_v22 }
  0xb4   :  { %868 = vmatpush.msrb.mxu3 %v1525_v52  ;;  %v789_v45 = vsub.f32 %v651_v18, %v695_v3  ;;  %696 = vmatpush.msrb.mxu0 %v695_v3 }
  0xb5   :  { %538 = vmatmul.f32.vlgmr.msra.gmra.mxu1 %v341_v13  ;;  %v342_v5 = vsub.f32 %v340_v58, %v341_v13 }
  0xb6   :  { %870 = vmatpush.msrb.mxu3 %v1527_v53  ;;  %781 = vmatpush.msrb.mxu1 %v780_v30  ;;  %v790_v27 = vand.u32 4294901760, %v789_v45 }
  0xb7   :  { %v343_v56 = vand.u32 4294901760, %v342_v5 }
  0xb8   :  { %872 = vmatpush.msrb.mxu3 %v1529_v62  ;;  %787 = vmatpush.msrb.mxu1 %v786_v31  ;;  %v791_v61 = vsub.f32 %v789_v45, %v790_v27 }
  0xb9   :  { %344 = vmatmul.f32.vlgmr.msrb.gmra.mxu2 %v343_v56  ;;  %644 = vmatmul.f32.vlgmr.msra.gmra.mxu3 %v339_v20  ;;  %v803_v56 = vsub.f32 %v801_v25, %v802_v49 }
  0xba   :  { %813 = vmatpush.msrb.mxu2 %v1536_v7  ;;  %874 = vmatpush.msrb.mxu3 %v1531_v63  ;;  %v792_v39 = vand.u32 4294901760, %v791_v61 }
  0xbb   :  { %v804_v9 = vand.u32 4294901760, %v803_v56 }
  0xbc   :  { %816 = vmatpush.msrb.mxu2 %v1539_v8  ;;  %876 = vmatpush.msrb.mxu3 %v1533_v0 }
  0xbd   :  { %793 = vmatpush.msrb.mxu1 %v792_v39 }
  0xbe   :  { %819 = vmatpush.msrb.mxu2 %v1542_v10  ;;  %878 = vmatpush.msrb.mxu3 %v1545_v12 }
  0xc0   :  { %822 = vmatpush.msrb.mxu2 %v1548_v14  ;;  %880 = vmatpush.msrb.mxu3 %v1584_v32 }
  0xc1   :  { %607 = vmatmul.f32.vlgmr.msra.gmra.mxu2 %v339_v20  ;;  %v697_v20 = vand.u32 4294901760, %v650_v40 }
  0xc2   :  { %825 = vmatpush.msrb.mxu2 %v1551_v15  ;;  %882 = vmatpush.msrb.mxu3 %v1587_v34 }
  0xc3   :  { %v795_v58 = vsub.f32 %v650_v40, %v697_v20  ;;  %698 = vmatpush.msrb.mxu0 %v697_v20 }
  0xc4   :  { %828 = vmatpush.msrb.mxu2 %v1554_v16  ;;  %884 = vmatpush.msrb.mxu3 %v1589_v35 }
  0xc5   :  { %v796_v13 = vand.u32 4294901760, %v795_v58  ;;  %700 = vmatpush.msrb.mxu0 %v699_v59 }
  0xc6   :  { %831 = vmatpush.msrb.mxu2 %v1563_v4  ;;  %886 = vmatpush.msrb.mxu3 %v1594_v41 }
  0xc7   :  { %907 = vmatpush.msra.mxu0 %v712_v33  ;;  %v797_v5 = vsub.f32 %v795_v58, %v796_v13 }
  0xc8   :  { %834 = vmatpush.msrb.mxu2 %v1597_v46  ;;  %888 = vmatpush.msrb.mxu3 %v1606_v19 }
  0xc9   :  { %911 = vmatpush.msra.mxu0 %v718_v26  ;;  %v798_v50 = vand.u32 4294901760, %v797_v5 }
  0xca   :  { %837 = vmatpush.msrb.mxu2 %v1600_v47  ;;  %890 = vmatpush.msrb.mxu3 %v1617_v54 }
  0xcb   :  { %915 = vmatpush.msra.mxu0 %v724_v38  ;;  %799 = vmatpush.msrb.mxu1 %v798_v50 }
  0xcc   :  { %840 = vmatpush.msrb.mxu2 %v1604_v11  ;;  %892 = vmatpush.msrb.mxu3 %v695_v3 }
  0xcd   :  { %919 = vmatpush.msra.mxu0 %v730_v42  ;;  %805 = vmatpush.msrb.mxu1 %v804_v9 }
  0xce   :  { %843 = vmatpush.msrb.mxu2 %v1615_v36  ;;  %894 = vmatpush.msrb.mxu3 %v697_v20 }
  0xcf   :  { %974 = vmatpush.msra.mxu1 %v1523_v37  ;;  %923 = vmatpush.msra.mxu0 %v736_v43  ;;  %v1038_v37 = vld [vmem:[%s1731_s4] ss:$0 sm:$0xff] }
  0xd0   :  { %846 = vmatpush.msrb.mxu2 %v1625_v6  ;;  %896 = vmatpush.msrb.mxu3 %v699_v59 }
  0xd1   :  { %976 = vmatpush.msra.mxu1 %v1525_v52  ;;  %927 = vmatpush.msra.mxu0 %v742_v51  ;;  %v1039_v51 = vld [vmem:[%s1733_s6] ss:$0 sm:$0xff] }
  0xd2   :  { %849 = vmatpush.msrb.mxu2 %v1634_v48 }
  0xd3   :  { %978 = vmatpush.msra.mxu1 %v1527_v53  ;;  %931 = vmatpush.msra.mxu0 %v748_v24 }
  0xd4   :  { %852 = vmatpush.msrb.mxu2 %v789_v45 }
  0xd5   :  { %980 = vmatpush.msra.mxu1 %v1529_v62  ;;  %935 = vmatpush.msra.mxu0 %v754_v28 }
  0xd6   :  { %855 = vmatpush.msrb.mxu2 %v795_v58 }
  0xd7   :  { %982 = vmatpush.msra.mxu1 %v1531_v63  ;;  %939 = vmatpush.msra.mxu0 %v760_v29 }
  0xd8   :  { %858 = vmatpush.msrb.mxu2 %v801_v25 }
  0xd9   :  { %984 = vmatpush.msra.mxu1 %v1533_v0  ;;  %943 = vmatpush.msra.mxu0 %v766_v2 }
  0xdb   :  { %986 = vmatpush.msra.mxu1 %v1545_v12  ;;  %947 = vmatpush.msra.mxu0 %v772_v44 }
  0xdd   :  { %988 = vmatpush.msra.mxu1 %v1584_v32  ;;  %951 = vmatpush.msra.mxu0 %v778_v55 }
  0xdf   :  { %990 = vmatpush.msra.mxu1 %v1587_v34  ;;  %955 = vmatpush.msra.mxu0 %v784_v57 }
  0xe1   :  { %992 = vmatpush.msra.mxu1 %v1589_v35  ;;  %959 = vmatpush.msra.mxu0 %v790_v27 }
  0xe3   :  { %994 = vmatpush.msra.mxu1 %v1594_v41  ;;  %963 = vmatpush.msra.mxu0 %v796_v13 }
  0xe5   :  { %996 = vmatpush.msra.mxu1 %v1606_v19  ;;  %967 = vmatpush.msra.mxu0 %v802_v49 }
  0xe7   :  { %998 = vmatpush.msra.mxu1 %v1617_v54 }
  0xe9   :  { %1000 = vmatpush.msra.mxu1 %v695_v3 }
  0xeb   :  { %1002 = vmatpush.msra.mxu1 %v697_v20 }
  0xed   :  { %1004 = vmatpush.msra.mxu1 %v699_v59 }
 0x130   :  { %v500_v0 = vpop.f32.mrf.mxu0 }
 0x132   :  { %v539_v8 = vpop.f32.mrf.mxu1 }
 0x134   :  { %v446_v52 = vpop.f32.mrf.mxu3 }
 0x13c   :  { %v345_v53 = vpop.f32.mrf.mxu2  ;;  %v645_v15 = vpop.f32.mrf.mxu3 }
 0x13d   :  { %v346_v62 = vadd.f32 %v1038_v37, %v345_v53 }
 0x13f   :  { %v447_v63 = vadd.f32 %v446_v52, %v346_v62 }
 0x141   :  { %v501_v7 = vadd.f32 %v500_v0, %v447_v63 }
 0x143   :  { %v540_v10 = vadd.f32 %v539_v8, %v501_v7 }
 0x144   :  { %v608_v12 = vpop.f32.mrf.mxu2 }
 0x145   :  { %v609_v14 = vadd.f32 %v608_v12, %v540_v10 }
 0x147   :  { %v646_v16 = vadd.f32 %v645_v15, %v609_v14 }
 0x149   :  { %v648_v33 = vmax.f32 %v646_v16, 0.0 }
 0x14b   :  { %v701_v26 = vand.u32 4294901760, %v648_v33 }
 0x14d   :  { %v702_v38 = vsub.f32 %v648_v33, %v701_v26  ;;  %807 = vmatmul.f32.vlgmr.msrb.gmra.mxu1 %v701_v26 }
 0x14f   :  { %861 = vmatmul.f32.vlgmr.msrb.gmra.mxu2 %v702_v38  ;;  %v703_v42 = vand.u32 4294901760, %v702_v38 }
 0x151   :  { %900 = vmatmul.f32.vlgmr.msrb.gmra.mxu3 %v703_v42  ;;  %v704_v43 = vsub.f32 %v702_v38, %v703_v42 }
 0x153   :  { %v705_v4 = vand.u32 4294901760, %v704_v43 }
 0x155   :  { %706 = vmatmul.f32.vlgmr.msrb.gmra.mxu0 %v705_v4  ;;  %1006 = vmatmul.f32.vlgmr.msra.gmra.mxu1 %v701_v26 }
 0x15d   :  { %969 = vmatmul.f32.vlgmr.msra.gmra.mxu0 %v701_v26 }
 0x1ca   :  { %v808_v24 = vpop.f32.mrf.mxu1 }
 0x1d2   :  { %v707_v32 = vpop.f32.mrf.mxu0  ;;  %v862_v41 = vpop.f32.mrf.mxu2 }
 0x1d3   :  { %v708_v34 = vadd.f32 %v1039_v51, %v707_v32  ;;  %v1007_v29 = vpop.f32.mrf.mxu1 }
 0x1d4   :  { %v901_v47 = vpop.f32.mrf.mxu3 }
 0x1d5   :  { %v809_v35 = vadd.f32 %v808_v24, %v708_v34 }
 0x1d7   :  { %v863_v46 = vadd.f32 %v862_v41, %v809_v35 }
 0x1d9   :  { %v902_v11 = vadd.f32 %v901_v47, %v863_v46 }
 0x1da   :  { %v970_v19 = vpop.f32.mrf.mxu0 }
 0x1db   :  { %v971_v28 = vadd.f32 %v970_v19, %v902_v11 }
 0x1dd   :  { %v1008_v36 = vadd.f32 %v1007_v29, %v971_v28 }
 0x1df   :  { %1010 = vst [vmem:[#allocation10] sm:$0xff] %v1008_v36 }
 0x1e0   :  { %1021 = dma.vmem_to_hbm [thread:$0]  %s1017_s24, 128, %s1019_s27, [#allocation4]  }
 0x1e1   :  { %1166 = dma.done.wait [#allocation4], 128  }
 0x1e2   :  { %1167 = vsyncadd [#allocation4], 4294967168 }
 0x1e3   :  { %1026 = vsyncpa [#allocation3], 1 }
 0x1e4   :  { %1027 = vsyncpa [#allocation6], 1 }
 0x1e5   :  { %1028 = vsyncpa [#allocation9], 1 }
 0x1e6   :  { %1029 = vsyncpa [#allocation4], 1 }

// kernel: tpu_custom_call.1
= control target key start
LH: loop header
LB: loop body
LE: loop exit
PB: predicated region body
PF: predicated region fallthrough
CT: control target
= control target key end

     0   :  { %12 = vsyncpa [#allocation3], 0  ;;  %s1727_s0 = inlined_call_operand.hbm [shape: f32[8,32], index: 0, kind: input, shape index: {}]   ;;  %s1728_s1 = inlined_call_operand.hbm [shape: f32[32,128], index: 1, kind: input, shape index: {}]   ;;  %s1729_s2 = inlined_call_operand.vmem [shape: f32[1,128], index: 2, kind: input, shape index: {}]   ;;  %s1730_s3 = inlined_call_operand.hbm [shape: f32[128,128], index: 3, kind: input, shape index: {}]   ;;  %s1731_s4 = inlined_call_operand.vmem [shape: f32[1,128], index: 4, kind: input, shape index: {}]   ;;  %s1732_s5 = inlined_call_operand.hbm [shape: f32[128,128], index: 5, kind: input, shape index: {}]   ;;  %s1733_s6 = inlined_call_operand.vmem [shape: f32[1,128], index: 6, kind: input, shape index: {}]   ;;  %s1734_s7 = inlined_call_operand.hbm [shape: f32[8,128], index: 7, kind: output, shape index: {}]  }
   0x1   :  { %13 = vsyncpa [#allocation6], 0 }
   0x2   :  { %14 = vsyncpa [#allocation9], 0  ;;  %s31_s26 = sshll.u32 %s1728_s1, 4  ;;  %s32_s26 = int_to_ptr.hbm [resolvable:$true] %s31_s26 }
   0x3   :  { %15 = vsyncpa [#allocation4], 0  ;;  %s1168_s27 = smov [#allocation5]   ;;  %s21_s8 = sshll.u32 %s1727_s0, 4  ;;  %s22_s8 = int_to_ptr.hbm [resolvable:$true] %s21_s8 }
   0x4   :  { %s33_s28 = sshll.u32 %s1168_s27, 4  ;;  %s1169_s9 = smov 128   ;;  %s34_s28 = int_to_ptr.vmem [resolvable:$true] %s33_s28 }
   0x5   :  { %s1170_s10 = smov 8   ;;  %s1171_s11 = smov [#allocation2]  }
   0x6   :  { %39 = dma.hbm_to_vmem [thread:$0]  %s32_s26, 512, %s34_s28, [#allocation6], %s1169_s9, %s1169_s9, %s1170_s10  }
   0x7   :  { %s23_s12 = sshll.u32 %s1171_s11, 4  ;;  %s46_s15 = sshll.u32 %s1730_s3, 4  ;;  %s24_s12 = int_to_ptr.vmem [resolvable:$true] %s23_s12  ;;  %s47_s15 = int_to_ptr.hbm [resolvable:$true] %s46_s15 }
   0x8   :  { %26 = dma.hbm_to_vmem [thread:$0]  %s22_s8, 128, %s24_s12, [#allocation3]  }
   0x9   :  { %s61_s17 = sshll.u32 %s1732_s5, 4  ;;  %s1172_s18 = smov [#allocation7]   ;;  %s62_s17 = int_to_ptr.hbm [resolvable:$true] %s61_s17 }
   0xa   :  { %s48_s19 = sshll.u32 %s1172_s18, 4  ;;  %s1173_s0 = smov [#allocation8]   ;;  %s49_s19 = int_to_ptr.vmem [resolvable:$true] %s48_s19 }
   0xb   :  { %54 = dma.hbm_to_vmem [thread:$0]  %s47_s15, 2048, %s49_s19, [#allocation6], %s1169_s9, %s1169_s9, %s1170_s10  }
   0xc   :  { %s63_s20 = sshll.u32 %s1173_s0, 4  ;;  %s64_s20 = int_to_ptr.vmem [resolvable:$true] %s63_s20 }
   0xd   :  { %69 = dma.hbm_to_vmem [thread:$0]  %s62_s17, 2048, %s64_s20, [#allocation9], %s1169_s9, %s1169_s9, %s1170_s10  }
   0xe   :  { %1160 = dma.done.wait [#allocation3], 128  }
   0xf   :  { %1161 = vsyncadd [#allocation3], 4294967168 }
  0x10   :  { %1162 = dma.done.wait [#allocation6], 2560  }
  0x11   :  { %1163 = vsyncadd [#allocation6], 4294964736 }
  0x12   :  { %1164 = dma.done.wait [#allocation9], 2048  }
  0x13   :  { %1165 = vsyncadd [#allocation9], 4294965248  ;;  %vm97_vm0 = vcmask 261120   ;;  %v92_v0 = vld [vmem:[#allocation5 + $0x18] sm:$0xff]  ;;  %v91_v1 = vld [vmem:[#allocation5 + $0x10] sm:$0xff]  ;;  %s1174_s23 = smov [#allocation10]  }
  0x14   :  { %v90_v2 = vld [vmem:[#allocation5 + $0x8] sm:$0xff]  ;;  %v1227_v3 = vand.u32 4294901760, %v92_v0  ;;  %v1229_v4 = vand.u32 4294901760, %v91_v1  ;;  %v89_v6 = vld [vmem:[#allocation5] sm:$0xff]  ;;  %v88_v7 = vld [vmem:[#allocation2] sm:$0xff]  ;;  %s1016_s24 = sshll.u32 %s1174_s23, 4  ;;  %s1017_s24 = int_to_ptr.vmem [resolvable:$true] %s1016_s24 }
  0x15   :  { %v1231_v5 = vand.u32 4294901760, %v90_v2  ;;  %v302_v8 = vld [vmem:[#allocation7 + $0x78] sm:$0xff]  ;;  %v1233_v9 = vand.u32 4294901760, %v89_v6  ;;  %v99_v10 = vsel %vm97_vm0, %v88_v7, 0  ;;  %v301_v12 = vld [vmem:[#allocation7 + $0x70] sm:$0xff]  ;;  %v300_v13 = vld [vmem:[#allocation7 + $0x68] sm:$0xff] }
  0x16   :  { %v1235_v11 = vand.u32 4294901760, %v302_v8  ;;  %v143_v14 = vsub.f32 %v92_v0, %v1227_v3  ;;  %114 = vmatpush.msra.mxu0 %v1227_v3  ;;  %v1240_v15 = vsub.f32 %v91_v1, %v1229_v4  ;;  %214 = vmatpush.msra.mxu3 %v1227_v3  ;;  %v1246_v17 = vand.u32 4294901760, %v99_v10  ;;  %v299_v38 = vld [vmem:[#allocation7 + $0x60] sm:$0xff]  ;;  %v298_v39 = vld [vmem:[#allocation7 + $0x58] sm:$0xff]  ;;  %v297_v40 = vld [vmem:[#allocation7 + $0x50] sm:$0xff]  ;;  %s1018_s27 = sshll.u32 %s1734_s7, 4  ;;  %s1019_s27 = int_to_ptr.hbm [resolvable:$true] %s1018_s27 }
  0x17   :  { %v1244_v16 = vsub.f32 %v90_v2, %v1231_v5  ;;  %v1249_v18 = vsub.f32 %v89_v6, %v1233_v9  ;;  %v1254_v20 = vand.u32 4294901760, %v301_v12  ;;  %v1256_v21 = vand.u32 4294901760, %v300_v13  ;;  %v296_v44 = vld [vmem:[#allocation7 + $0x48] sm:$0xff]  ;;  %v295_v45 = vld [vmem:[#allocation7 + $0x40] sm:$0xff]  ;;  %v294_v50 = vld [vmem:[#allocation7 + $0x38] sm:$0xff] }
  0x18   :  { %v1252_v19 = vsub.f32 %v302_v8, %v1235_v11  ;;  %185 = vmatpush.msra.mxu2 %v143_v14  ;;  %116 = vmatpush.msra.mxu0 %v1229_v4  ;;  %v144_v22 = vand.u32 4294901760, %v143_v14  ;;  %v150_v23 = vand.u32 4294901760, %v1240_v15  ;;  %v122_v24 = vsub.f32 %v99_v10, %v1246_v17  ;;  %v293_v55 = vld [vmem:[#allocation7 + $0x30] sm:$0xff]  ;;  %v292_v60 = vld [vmem:[#allocation7 + $0x28] sm:$0xff] }
  0x19   :  { %v156_v25 = vand.u32 4294901760, %v1244_v16  ;;  %216 = vmatpush.msra.mxu3 %v1229_v4  ;;  %v162_v26 = vand.u32 4294901760, %v1249_v18  ;;  %v1266_v28 = vsub.f32 %v301_v12, %v1254_v20  ;;  %v1269_v29 = vsub.f32 %v300_v13, %v1256_v21 }
  0x1a   :  { %v350_v27 = vand.u32 4294901760, %v1252_v19  ;;  %188 = vmatpush.msra.mxu2 %v1240_v15  ;;  %v145_v30 = vsub.f32 %v143_v14, %v144_v22  ;;  %118 = vmatpush.msra.mxu0 %v1231_v5  ;;  %v151_v31 = vsub.f32 %v1240_v15, %v150_v23  ;;  %v123_v33 = vand.u32 4294901760, %v122_v24 }
  0x1b   :  { %v157_v32 = vsub.f32 %v1244_v16, %v156_v25  ;;  %218 = vmatpush.msra.mxu3 %v1231_v5  ;;  %v163_v34 = vsub.f32 %v1249_v18, %v162_v26  ;;  %v356_v36 = vand.u32 4294901760, %v1266_v28  ;;  %v362_v37 = vand.u32 4294901760, %v1269_v29 }
  0x1c   :  { %v351_v35 = vsub.f32 %v1252_v19, %v350_v27  ;;  %v146_v41 = vand.u32 4294901760, %v145_v30  ;;  %191 = vmatpush.msra.mxu2 %v1244_v16  ;;  %v152_v42 = vand.u32 4294901760, %v151_v31  ;;  %120 = vmatpush.msra.mxu0 %v1233_v9  ;;  %v124_v43 = vsub.f32 %v122_v24, %v123_v33  ;;  %v291_v30 = vld [vmem:[#allocation7 + $0x20] sm:$0xff]  ;;  %v290_v31 = vld [vmem:[#allocation7 + $0x18] sm:$0xff] }
  0x1d   :  { %v158_v46 = vand.u32 4294901760, %v157_v32  ;;  %220 = vmatpush.msra.mxu3 %v1233_v9  ;;  %v357_v48 = vsub.f32 %v1266_v28, %v356_v36  ;;  %v363_v49 = vsub.f32 %v1269_v29, %v362_v37  ;;  %v1296_v52 = vand.u32 4294901760, %v299_v38 }
  0x1e   :  { %243 = vmatpush.msrb.mxu0 %v144_v22  ;;  %v352_v47 = vand.u32 4294901760, %v351_v35  ;;  %147 = vmatpush.msra.mxu1 %v146_v41  ;;  %v125_v51 = vand.u32 4294901760, %v124_v43  ;;  %v1298_v53 = vand.u32 4294901760, %v298_v39  ;;  %v1300_v54 = vand.u32 4294901760, %v297_v40 }
  0x1f   :  { %194 = vmatpush.msra.mxu2 %v1249_v18  ;;  %224 = vmatmul.f32.vlgmr.msra.gmra.mxu3 %v123_v33  ;;  %v164_v56 = vand.u32 4294901760, %v163_v34  ;;  %v358_v57 = vand.u32 4294901760, %v357_v48  ;;  %v1302_v58 = vand.u32 4294901760, %v296_v44  ;;  %v1304_v59 = vand.u32 4294901760, %v295_v45  ;;  %v289_v34 = vld [vmem:[#allocation7 + $0x10] sm:$0xff] }
  0x20   :  { %197 = vmatmul.f32.vlgmr.msra.gmra.mxu2 %v122_v24  ;;  %153 = vmatpush.msra.mxu1 %v152_v42  ;;  %v1307_v61 = vsub.f32 %v299_v38, %v1296_v52  ;;  %v1310_v62 = vsub.f32 %v298_v39, %v1298_v53  ;;  %v1313_v63 = vsub.f32 %v297_v40, %v1300_v54  ;;  %v1315_v0 = vand.u32 4294901760, %v294_v50  ;;  %v288_v40 = vld [vmem:[#allocation7 + $0x8] sm:$0xff] }
  0x21   :  { %126 = vmatmul.f32.vlgmr.msra.gmra.mxu0 %v125_v51  ;;  %353 = vmatpush.msrb.mxu3 %v352_v47  ;;  %v364_v1 = vand.u32 4294901760, %v363_v49  ;;  %v1318_v2 = vsub.f32 %v296_v44, %v1302_v58  ;;  %v1321_v6 = vsub.f32 %v295_v45, %v1304_v59  ;;  %v1323_v7 = vand.u32 4294901760, %v293_v55  ;;  %v287_v45 = vld [vmem:[#allocation7] sm:$0xff] }
  0x22   :  { %247 = vmatpush.msrb.mxu0 %v150_v23  ;;  %159 = vmatpush.msra.mxu1 %v158_v46  ;;  %v368_v8 = vand.u32 4294901760, %v1307_v61  ;;  %v374_v10 = vand.u32 4294901760, %v1310_v62  ;;  %v380_v12 = vand.u32 4294901760, %v1313_v63  ;;  %v1329_v13 = vand.u32 4294901760, %v292_v60 }
  0x23   :  { %308 = vmatpush.msrb.mxu2 %v1235_v11  ;;  %359 = vmatpush.msrb.mxu3 %v358_v57  ;;  %v386_v14 = vand.u32 4294901760, %v1318_v2  ;;  %v1335_v15 = vsub.f32 %v294_v50, %v1315_v0  ;;  %v392_v16 = vand.u32 4294901760, %v1321_v6  ;;  %v1369_v38 = vand.u32 4294901760, %v291_v30 }
  0x24   :  { %251 = vmatpush.msrb.mxu0 %v156_v25  ;;  %165 = vmatpush.msra.mxu1 %v164_v56  ;;  %v369_v22 = vsub.f32 %v1307_v61, %v368_v8  ;;  %v375_v23 = vsub.f32 %v1310_v62, %v374_v10  ;;  %v381_v24 = vsub.f32 %v1313_v63, %v380_v12  ;;  %v1371_v39 = vand.u32 4294901760, %v290_v31 }
  0x25   :  { %310 = vmatpush.msrb.mxu2 %v1254_v20  ;;  %167 = vmatmul.f32.vlgmr.msra.gmra.mxu1 %v1246_v17  ;;  %v1352_v25 = vsub.f32 %v293_v55, %v1323_v7  ;;  %v1356_v33 = vsub.f32 %v292_v60, %v1329_v13  ;;  %v387_v18 = vsub.f32 %v1318_v2, %v386_v14  ;;  %v1375_v43 = vand.u32 4294901760, %v289_v34 }
  0x26   :  { %255 = vmatpush.msrb.mxu0 %v162_v26  ;;  %274 = vmatpush.msrb.mxu1 %v1227_v3  ;;  %v370_v32 = vand.u32 4294901760, %v369_v22  ;;  %v376_v35 = vand.u32 4294901760, %v375_v23  ;;  %v398_v26 = vand.u32 4294901760, %v1335_v15  ;;  %v393_v3 = vsub.f32 %v1321_v6, %v392_v16 }
  0x27   :  { %365 = vmatpush.msrb.mxu3 %v364_v1  ;;  %312 = vmatpush.msrb.mxu2 %v1256_v21  ;;  %v382_v41 = vand.u32 4294901760, %v381_v24  ;;  %v404_v42 = vand.u32 4294901760, %v1352_v25  ;;  %v1380_v44 = vsub.f32 %v291_v30, %v1369_v38  ;;  %v388_v46 = vand.u32 4294901760, %v387_v18 }
  0x28   :  { %451 = vmatpush.msra.mxu0 %v1252_v19  ;;  %276 = vmatpush.msrb.mxu1 %v1229_v4  ;;  %v410_v4 = vand.u32 4294901760, %v1356_v33  ;;  %v399_v47 = vsub.f32 %v1335_v15, %v398_v26  ;;  %v1388_v48 = vsub.f32 %v290_v31, %v1371_v39  ;;  %v394_v49 = vand.u32 4294901760, %v393_v3 }
  0x29   :  { %257 = vmatmul.f32.vlgmr.msrb.gmra.mxu0 %v1246_v17  ;;  %371 = vmatpush.msrb.mxu3 %v370_v32  ;;  %v405_v50 = vsub.f32 %v1352_v25, %v404_v42  ;;  %v416_v51 = vand.u32 4294901760, %v1380_v44  ;;  %v1400_v55 = vsub.f32 %v289_v34, %v1375_v43  ;;  %v1402_v56 = vand.u32 4294901760, %v287_v45 }
  0x2a   :  { %314 = vmatpush.msrb.mxu2 %v1296_v52  ;;  %278 = vmatpush.msrb.mxu1 %v1231_v5  ;;  %v1390_v5 = vand.u32 4294901760, %v288_v40  ;;  %v422_v57 = vand.u32 4294901760, %v1388_v48 }
  0x2b   :  { %454 = vmatpush.msra.mxu0 %v1266_v28  ;;  %377 = vmatpush.msrb.mxu3 %v376_v35  ;;  %v406_v1 = vand.u32 4294901760, %v405_v50  ;;  %v417_v22 = vsub.f32 %v1380_v44, %v416_v51  ;;  %v428_v23 = vand.u32 4294901760, %v1400_v55  ;;  %v1421_v24 = vsub.f32 %v287_v45, %v1402_v56  ;;  %v662_v28 = vld [vmem:[#allocation8 + $0x68] sm:$0xff] }
  0x2c   :  { %316 = vmatpush.msrb.mxu2 %v1298_v53  ;;  %280 = vmatpush.msrb.mxu1 %v1233_v9  ;;  %v400_v9 = vand.u32 4294901760, %v399_v47  ;;  %v1411_v60 = vsub.f32 %v288_v40, %v1390_v5  ;;  %v423_v31 = vsub.f32 %v1388_v48, %v422_v57 }
  0x2d   :  { %457 = vmatpush.msra.mxu0 %v1269_v29  ;;  %282 = vmatmul.f32.vlgmr.msrb.gmra.mxu1 %v1246_v17  ;;  %v411_v17 = vsub.f32 %v1356_v33, %v410_v4  ;;  %v418_v34 = vand.u32 4294901760, %v417_v22  ;;  %v429_v35 = vsub.f32 %v1400_v55, %v428_v23  ;;  %v440_v18 = vand.u32 4294901760, %v1421_v24 }
  0x2e   :  { %383 = vmatpush.msrb.mxu3 %v382_v41  ;;  %318 = vmatpush.msrb.mxu2 %v1300_v54  ;;  %v434_v32 = vand.u32 4294901760, %v1411_v60  ;;  %v424_v3 = vand.u32 4294901760, %v423_v31 }
  0x2f   :  { %504 = vmatpush.msra.mxu1 %v1235_v11  ;;  %460 = vmatpush.msra.mxu0 %v1307_v61  ;;  %v412_v30 = vand.u32 4294901760, %v411_v17  ;;  %v430_v41 = vand.u32 4294901760, %v429_v35  ;;  %v441_v45 = vsub.f32 %v1421_v24, %v440_v18 }
  0x30   :  { %389 = vmatpush.msrb.mxu3 %v388_v46  ;;  %320 = vmatpush.msrb.mxu2 %v1302_v58  ;;  %v435_v40 = vsub.f32 %v1411_v60, %v434_v32 }
  0x31   :  { %506 = vmatpush.msra.mxu1 %v1254_v20  ;;  %463 = vmatpush.msra.mxu0 %v1310_v62  ;;  %v442_v47 = vand.u32 4294901760, %v441_v45  ;;  %v652_v45 = vld [vmem:[#allocation8 + $0x18] sm:$0xff] }
  0x32   :  { %395 = vmatpush.msrb.mxu3 %v394_v49  ;;  %322 = vmatpush.msrb.mxu2 %v1304_v59  ;;  %v436_v46 = vand.u32 4294901760, %v435_v40 }
  0x33   :  { %508 = vmatpush.msra.mxu1 %v1256_v21  ;;  %466 = vmatpush.msra.mxu0 %v1313_v63 }
  0x34   :  { %401 = vmatpush.msrb.mxu3 %v400_v9  ;;  %324 = vmatpush.msrb.mxu2 %v1315_v0  ;;  %v655_v9 = vld [vmem:[#allocation8 + $0x30] sm:$0xff] }
  0x35   :  { %510 = vmatpush.msra.mxu1 %v1296_v52  ;;  %469 = vmatpush.msra.mxu0 %v1318_v2  ;;  %v658_v2 = vld [vmem:[#allocation8 + $0x48] sm:$0xff]  ;;  %v1589_v35 = vand.u32 4294901760, %v655_v9 }
  0x36   :  { %407 = vmatpush.msrb.mxu3 %v406_v1  ;;  %326 = vmatpush.msrb.mxu2 %v1323_v7  ;;  %v654_v1 = vld [vmem:[#allocation8 + $0x28] sm:$0xff] }
  0x37   :  { %512 = vmatpush.msra.mxu1 %v1298_v53  ;;  %472 = vmatpush.msra.mxu0 %v1321_v6 }
  0x38   :  { %413 = vmatpush.msrb.mxu3 %v412_v30  ;;  %328 = vmatpush.msrb.mxu2 %v1329_v13  ;;  %v653_v30 = vld [vmem:[#allocation8 + $0x20] sm:$0xff] }
  0x39   :  { %514 = vmatpush.msra.mxu1 %v1300_v54  ;;  %475 = vmatpush.msra.mxu0 %v1335_v15 }
  0x3a   :  { %419 = vmatpush.msrb.mxu3 %v418_v34  ;;  %330 = vmatpush.msrb.mxu2 %v1369_v38 }
  0x3b   :  { %516 = vmatpush.msra.mxu1 %v1302_v58  ;;  %478 = vmatpush.msra.mxu0 %v1352_v25 }
  0x3c   :  { %425 = vmatpush.msrb.mxu3 %v424_v3  ;;  %332 = vmatpush.msrb.mxu2 %v1371_v39 }
  0x3d   :  { %518 = vmatpush.msra.mxu1 %v1304_v59  ;;  %481 = vmatpush.msra.mxu0 %v1356_v33 }
  0x3e   :  { %431 = vmatpush.msrb.mxu3 %v430_v41  ;;  %334 = vmatpush.msrb.mxu2 %v1375_v43  ;;  %v1594_v41 = vand.u32 4294901760, %v654_v1 }
  0x3f   :  { %520 = vmatpush.msra.mxu1 %v1315_v0  ;;  %484 = vmatpush.msra.mxu0 %v1380_v44 }
  0x40   :  { %437 = vmatpush.msrb.mxu3 %v436_v46  ;;  %336 = vmatpush.msrb.mxu2 %v1390_v5 }
  0x41   :  { %522 = vmatpush.msra.mxu1 %v1323_v7  ;;  %487 = vmatpush.msra.mxu0 %v1388_v48 }
  0x42   :  { %443 = vmatpush.msrb.mxu3 %v442_v47  ;;  %338 = vmatpush.msrb.mxu2 %v1402_v56 }
  0x43   :  { %524 = vmatpush.msra.mxu1 %v1329_v13  ;;  %490 = vmatpush.msra.mxu0 %v1400_v55  ;;  %v657_v55 = vld [vmem:[#allocation8 + $0x40] sm:$0xff] }
  0x44   :  { %612 = vmatpush.msra.mxu3 %v1235_v11  ;;  %545 = vmatpush.msra.mxu2 %v350_v27  ;;  %v1037_v11 = vld [vmem:[%s1729_s2] ss:$0 sm:$0xff]  ;;  %v663_v27 = vld [vmem:[#allocation8 + $0x70] sm:$0xff] }
  0x45   :  { %526 = vmatpush.msra.mxu1 %v1369_v38  ;;  %493 = vmatpush.msra.mxu0 %v1411_v60 }
  0x46   :  { %614 = vmatpush.msra.mxu3 %v1254_v20  ;;  %549 = vmatpush.msra.mxu2 %v356_v36 }
  0x47   :  { %528 = vmatpush.msra.mxu1 %v1371_v39  ;;  %496 = vmatpush.msra.mxu0 %v1421_v24 }
  0x48   :  { %616 = vmatpush.msra.mxu3 %v1256_v21  ;;  %553 = vmatpush.msra.mxu2 %v362_v37  ;;  %v664_v21 = vld [vmem:[#allocation8 + $0x78] sm:$0xff] }
  0x49   :  { %530 = vmatpush.msra.mxu1 %v1375_v43  ;;  %v1523_v37 = vand.u32 4294901760, %v664_v21 }
  0x4a   :  { %618 = vmatpush.msra.mxu3 %v1296_v52  ;;  %557 = vmatpush.msra.mxu2 %v368_v8  ;;  %v1525_v52 = vand.u32 4294901760, %v663_v27 }
  0x4b   :  { %532 = vmatpush.msra.mxu1 %v1390_v5  ;;  %670 = vmatpush.msrb.mxu0 %v1523_v37 }
  0x4c   :  { %620 = vmatpush.msra.mxu3 %v1298_v53  ;;  %561 = vmatpush.msra.mxu2 %v374_v10  ;;  %v1527_v53 = vand.u32 4294901760, %v662_v28  ;;  %v1539_v8 = vsub.f32 %v663_v27, %v1525_v52 }
  0x4d   :  { %534 = vmatpush.msra.mxu1 %v1402_v56  ;;  %672 = vmatpush.msrb.mxu0 %v1525_v52 }
  0x4e   :  { %622 = vmatpush.msra.mxu3 %v1300_v54  ;;  %565 = vmatpush.msra.mxu2 %v380_v12  ;;  %v661_v54 = vld [vmem:[#allocation8 + $0x60] sm:$0xff]  ;;  %v1542_v10 = vsub.f32 %v662_v28, %v1527_v53  ;;  %v1545_v12 = vand.u32 4294901760, %v658_v2 }
  0x4f   :  { %v1529_v62 = vand.u32 4294901760, %v661_v54  ;;  %674 = vmatpush.msrb.mxu0 %v1527_v53 }
  0x50   :  { %624 = vmatpush.msra.mxu3 %v1302_v58  ;;  %569 = vmatpush.msra.mxu2 %v386_v14  ;;  %v660_v58 = vld [vmem:[#allocation8 + $0x58] sm:$0xff] }
  0x51   :  { %v1531_v63 = vand.u32 4294901760, %v660_v58  ;;  %v1548_v14 = vsub.f32 %v661_v54, %v1529_v62  ;;  %676 = vmatpush.msrb.mxu0 %v1529_v62  ;;  %v1617_v54 = vand.u32 4294901760, %v652_v45 }
  0x52   :  { %626 = vmatpush.msra.mxu3 %v1304_v59  ;;  %573 = vmatpush.msra.mxu2 %v392_v16  ;;  %v659_v59 = vld [vmem:[#allocation8 + $0x50] sm:$0xff] }
  0x53   :  { %v1551_v15 = vsub.f32 %v660_v58, %v1531_v63  ;;  %678 = vmatpush.msrb.mxu0 %v1531_v63 }
  0x54   :  { %628 = vmatpush.msra.mxu3 %v1315_v0  ;;  %577 = vmatpush.msra.mxu2 %v398_v26  ;;  %v1533_v0 = vand.u32 4294901760, %v659_v59  ;;  %v718_v26 = vand.u32 4294901760, %v1539_v8 }
  0x56   :  { %630 = vmatpush.msra.mxu3 %v1323_v7  ;;  %581 = vmatpush.msra.mxu2 %v404_v42  ;;  %v1536_v7 = vsub.f32 %v664_v21, %v1523_v37  ;;  %v1554_v16 = vsub.f32 %v659_v59, %v1533_v0  ;;  %v730_v42 = vand.u32 4294901760, %v1548_v14  ;;  %v719_v48 = vsub.f32 %v1539_v8, %v718_v26 }
  0x57   :  { %680 = vmatpush.msrb.mxu0 %v1533_v0 }
  0x58   :  { %632 = vmatpush.msra.mxu3 %v1329_v13  ;;  %585 = vmatpush.msra.mxu2 %v410_v4  ;;  %v712_v33 = vand.u32 4294901760, %v1536_v7  ;;  %v1563_v4 = vsub.f32 %v658_v2, %v1545_v12  ;;  %v731_v50 = vsub.f32 %v1548_v14, %v730_v42  ;;  %v720_v60 = vand.u32 4294901760, %v719_v48 }
  0x59   :  { %682 = vmatpush.msrb.mxu0 %v1545_v12  ;;  %v1634_v48 = vsub.f32 %v652_v45, %v1617_v54 }
  0x5a   :  { %634 = vmatpush.msra.mxu3 %v1369_v38  ;;  %589 = vmatpush.msra.mxu2 %v416_v51  ;;  %v724_v38 = vand.u32 4294901760, %v1542_v10  ;;  %v713_v44 = vsub.f32 %v1536_v7, %v712_v33  ;;  %v742_v51 = vand.u32 4294901760, %v1554_v16  ;;  %v748_v24 = vand.u32 4294901760, %v1563_v4 }
  0x5b   :  { %v732_v3 = vand.u32 4294901760, %v731_v50 }
  0x5c   :  { %636 = vmatpush.msra.mxu3 %v1371_v39  ;;  %593 = vmatpush.msra.mxu2 %v422_v57  ;;  %v714_v57 = vand.u32 4294901760, %v713_v44  ;;  %v743_v40 = vsub.f32 %v1554_v16, %v742_v51  ;;  %v749_v27 = vsub.f32 %v1563_v4, %v748_v24 }
  0x5e   :  { %638 = vmatpush.msra.mxu3 %v1375_v43  ;;  %597 = vmatpush.msra.mxu2 %v428_v23  ;;  %v736_v43 = vand.u32 4294901760, %v1551_v15  ;;  %v744_v59 = vand.u32 4294901760, %v743_v40  ;;  %v650_v40 = vld [vmem:[#allocation8 + $0x8] sm:$0xff] }
  0x5f   :  { %715 = vmatpush.msrb.mxu1 %v714_v57  ;;  %v784_v57 = vand.u32 4294901760, %v1634_v48 }
  0x60   :  { %640 = vmatpush.msra.mxu3 %v1390_v5  ;;  %601 = vmatpush.msra.mxu2 %v434_v32  ;;  %v725_v5 = vsub.f32 %v1542_v10, %v724_v38  ;;  %v737_v23 = vsub.f32 %v1551_v15, %v736_v43  ;;  %v1584_v32 = vand.u32 4294901760, %v657_v55 }
  0x61   :  { %721 = vmatpush.msrb.mxu1 %v720_v60 }
  0x62   :  { %642 = vmatpush.msra.mxu3 %v1402_v56  ;;  %605 = vmatpush.msra.mxu2 %v440_v18  ;;  %v656_v56 = vld [vmem:[#allocation8 + $0x38] sm:$0xff]  ;;  %v726_v31 = vand.u32 4294901760, %v725_v5  ;;  %v1597_v46 = vsub.f32 %v657_v55, %v1584_v32  ;;  %v738_v21 = vand.u32 4294901760, %v737_v23  ;;  %v785_v23 = vsub.f32 %v1634_v48, %v784_v57 }
  0x63   :  { %v1587_v34 = vand.u32 4294901760, %v656_v56  ;;  %684 = vmatpush.msrb.mxu0 %v1584_v32 }
  0x64   :  { %727 = vmatpush.msrb.mxu1 %v726_v31  ;;  %v754_v28 = vand.u32 4294901760, %v1597_v46  ;;  %v786_v31 = vand.u32 4294901760, %v785_v23 }
  0x65   :  { %v1600_v47 = vsub.f32 %v656_v56, %v1587_v34  ;;  %686 = vmatpush.msrb.mxu0 %v1587_v34 }
  0x66   :  { %733 = vmatpush.msrb.mxu1 %v732_v3 }
  0x67   :  { %688 = vmatpush.msrb.mxu0 %v1589_v35 }
  0x68   :  { %739 = vmatpush.msrb.mxu1 %v738_v21  ;;  %v649_v21 = vld [vmem:[#allocation8] sm:$0xff] }
  0x69   :  { %690 = vmatpush.msrb.mxu0 %v1594_v41 }
  0x6a   :  { %745 = vmatpush.msrb.mxu1 %v744_v59  ;;  %v699_v59 = vand.u32 4294901760, %v649_v21 }
  0x9e   :  { %v127_v19 = vpop.f32.mrf.mxu0 }
  0x9f   :  { %v128_v20 = vadd.f32 %v1037_v11, %v127_v19  ;;  %v1604_v11 = vsub.f32 %v655_v9, %v1589_v35  ;;  %v1606_v19 = vand.u32 4294901760, %v653_v30 }
  0xa1   :  { %v766_v2 = vand.u32 4294901760, %v1604_v11  ;;  %692 = vmatpush.msrb.mxu0 %v1606_v19 }
  0xa2   :  { %v168_v29 = vpop.f32.mrf.mxu1  ;;  %v225_v6 = vpop.f32.mrf.mxu3 }
  0xa3   :  { %v198_v36 = vpop.f32.mrf.mxu2  ;;  %v169_v61 = vadd.f32 %v168_v29, %v128_v20  ;;  %v760_v29 = vand.u32 4294901760, %v1600_v47  ;;  %v767_v50 = vsub.f32 %v1604_v11, %v766_v2  ;;  %694 = vmatpush.msrb.mxu0 %v1617_v54 }
  0xa5   :  { %v199_v13 = vadd.f32 %v198_v36, %v169_v61  ;;  %v1615_v36 = vsub.f32 %v654_v1, %v1594_v41  ;;  %v755_v61 = vsub.f32 %v1597_v46, %v754_v28  ;;  %v768_v60 = vand.u32 4294901760, %v767_v50 }
  0xa6   :  { %v258_v25 = vpop.f32.mrf.mxu0 }
  0xa7   :  { %v226_v39 = vadd.f32 %v225_v6, %v199_v13  ;;  %v1625_v6 = vsub.f32 %v653_v30, %v1606_v19  ;;  %v772_v44 = vand.u32 4294901760, %v1615_v36 }
  0xa9   :  { %v259_v49 = vadd.f32 %v258_v25, %v226_v39  ;;  %v750_v25 = vand.u32 4294901760, %v749_v27  ;;  %v761_v39 = vsub.f32 %v1600_v47, %v760_v29  ;;  %v778_v55 = vand.u32 4294901760, %v1625_v6 }
  0xaa   :  { %v283_v17 = vpop.f32.mrf.mxu1 }
  0xab   :  { %v284_v22 = vadd.f32 %v283_v17, %v259_v49  ;;  %v756_v49 = vand.u32 4294901760, %v755_v61  ;;  %751 = vmatpush.msrb.mxu1 %v750_v25  ;;  %v762_v9 = vand.u32 4294901760, %v761_v39  ;;  %v773_v17 = vsub.f32 %v1615_v36, %v772_v44 }
  0xac   :  { %v779_v1 = vsub.f32 %v1625_v6, %v778_v55  ;;  %v801_v25 = vsub.f32 %v649_v21, %v699_v59 }
  0xad   :  { %v286_v18 = vmax.f32 %v284_v22, 0.0  ;;  %757 = vmatpush.msrb.mxu1 %v756_v49  ;;  %v774_v22 = vand.u32 4294901760, %v773_v17 }
  0xae   :  { %v780_v30 = vand.u32 4294901760, %v779_v1  ;;  %v802_v49 = vand.u32 4294901760, %v801_v25 }
  0xaf   :  { %v339_v20 = vand.u32 4294901760, %v286_v18  ;;  %763 = vmatpush.msrb.mxu1 %v762_v9 }
  0xb1   :  { %v340_v58 = vsub.f32 %v286_v18, %v339_v20  ;;  %445 = vmatmul.f32.vlgmr.msrb.gmra.mxu3 %v339_v20  ;;  %769 = vmatpush.msrb.mxu1 %v768_v60  ;;  %v651_v18 = vld [vmem:[#allocation8 + $0x10] sm:$0xff] }
  0xb2   :  { %866 = vmatpush.msrb.mxu3 %v1523_v37  ;;  %v695_v3 = vand.u32 4294901760, %v651_v18 }
  0xb3   :  { %499 = vmatmul.f32.vlgmr.msra.gmra.mxu0 %v340_v58  ;;  %v341_v13 = vand.u32 4294901760, %v340_v58  ;;  %775 = vmatpush.msrb.mxu1 %v774_v22 }
  0xb4   :  { %868 = vmatpush.msrb.mxu3 %v1525_v52  ;;  %v789_v45 = vsub.f32 %v651_v18, %v695_v3  ;;  %696 = vmatpush.msrb.mxu0 %v695_v3 }
  0xb5   :  { %538 = vmatmul.f32.vlgmr.msra.gmra.mxu1 %v341_v13  ;;  %v342_v5 = vsub.f32 %v340_v58, %v341_v13 }
  0xb6   :  { %870 = vmatpush.msrb.mxu3 %v1527_v53  ;;  %781 = vmatpush.msrb.mxu1 %v780_v30  ;;  %v790_v27 = vand.u32 4294901760, %v789_v45 }
  0xb7   :  { %v343_v56 = vand.u32 4294901760, %v342_v5 }
  0xb8   :  { %872 = vmatpush.msrb.mxu3 %v1529_v62  ;;  %787 = vmatpush.msrb.mxu1 %v786_v31  ;;  %v791_v61 = vsub.f32 %v789_v45, %v790_v27 }
  0xb9   :  { %344 = vmatmul.f32.vlgmr.msrb.gmra.mxu2 %v343_v56  ;;  %644 = vmatmul.f32.vlgmr.msra.gmra.mxu3 %v339_v20  ;;  %v803_v56 = vsub.f32 %v801_v25, %v802_v49 }
  0xba   :  { %813 = vmatpush.msrb.mxu2 %v1536_v7  ;;  %874 = vmatpush.msrb.mxu3 %v1531_v63  ;;  %v792_v39 = vand.u32 4294901760, %v791_v61 }
  0xbb   :  { %v804_v9 = vand.u32 4294901760, %v803_v56 }
  0xbc   :  { %816 = vmatpush.msrb.mxu2 %v1539_v8  ;;  %876 = vmatpush.msrb.mxu3 %v1533_v0 }
  0xbd   :  { %793 = vmatpush.msrb.mxu1 %v792_v39 }
  0xbe   :  { %819 = vmatpush.msrb.mxu2 %v1542_v10  ;;  %878 = vmatpush.msrb.mxu3 %v1545_v12 }
  0xc0   :  { %822 = vmatpush.msrb.mxu2 %v1548_v14  ;;  %880 = vmatpush.msrb.mxu3 %v1584_v32 }
  0xc1   :  { %607 = vmatmul.f32.vlgmr.msra.gmra.mxu2 %v339_v20  ;;  %v697_v20 = vand.u32 4294901760, %v650_v40 }
  0xc2   :  { %825 = vmatpush.msrb.mxu2 %v1551_v15  ;;  %882 = vmatpush.msrb.mxu3 %v1587_v34 }
  0xc3   :  { %v795_v58 = vsub.f32 %v650_v40, %v697_v20  ;;  %698 = vmatpush.msrb.mxu0 %v697_v20 }
  0xc4   :  { %828 = vmatpush.msrb.mxu2 %v1554_v16  ;;  %884 = vmatpush.msrb.mxu3 %v1589_v35 }
  0xc5   :  { %v796_v13 = vand.u32 4294901760, %v795_v58  ;;  %700 = vmatpush.msrb.mxu0 %v699_v59 }
  0xc6   :  { %831 = vmatpush.msrb.mxu2 %v1563_v4  ;;  %886 = vmatpush.msrb.mxu3 %v1594_v41 }
  0xc7   :  { %907 = vmatpush.msra.mxu0 %v712_v33  ;;  %v797_v5 = vsub.f32 %v795_v58, %v796_v13 }
  0xc8   :  { %834 = vmatpush.msrb.mxu2 %v1597_v46  ;;  %888 = vmatpush.msrb.mxu3 %v1606_v19 }
  0xc9   :  { %911 = vmatpush.msra.mxu0 %v718_v26  ;;  %v798_v50 = vand.u32 4294901760, %v797_v5 }
  0xca   :  { %837 = vmatpush.msrb.mxu2 %v1600_v47  ;;  %890 = vmatpush.msrb.mxu3 %v1617_v54 }
  0xcb   :  { %915 = vmatpush.msra.mxu0 %v724_v38  ;;  %799 = vmatpush.msrb.mxu1 %v798_v50 }
  0xcc   :  { %840 = vmatpush.msrb.mxu2 %v1604_v11  ;;  %892 = vmatpush.msrb.mxu3 %v695_v3 }
  0xcd   :  { %919 = vmatpush.msra.mxu0 %v730_v42  ;;  %805 = vmatpush.msrb.mxu1 %v804_v9 }
  0xce   :  { %843 = vmatpush.msrb.mxu2 %v1615_v36  ;;  %894 = vmatpush.msrb.mxu3 %v697_v20 }
  0xcf   :  { %974 = vmatpush.msra.mxu1 %v1523_v37  ;;  %923 = vmatpush.msra.mxu0 %v736_v43  ;;  %v1038_v37 = vld [vmem:[%s1731_s4] ss:$0 sm:$0xff] }
  0xd0   :  { %846 = vmatpush.msrb.mxu2 %v1625_v6  ;;  %896 = vmatpush.msrb.mxu3 %v699_v59 }
  0xd1   :  { %976 = vmatpush.msra.mxu1 %v1525_v52  ;;  %927 = vmatpush.msra.mxu0 %v742_v51  ;;  %v1039_v51 = vld [vmem:[%s1733_s6] ss:$0 sm:$0xff] }
  0xd2   :  { %849 = vmatpush.msrb.mxu2 %v1634_v48 }
  0xd3   :  { %978 = vmatpush.msra.mxu1 %v1527_v53  ;;  %931 = vmatpush.msra.mxu0 %v748_v24 }
  0xd4   :  { %852 = vmatpush.msrb.mxu2 %v789_v45 }
  0xd5   :  { %980 = vmatpush.msra.mxu1 %v1529_v62  ;;  %935 = vmatpush.msra.mxu0 %v754_v28 }
  0xd6   :  { %855 = vmatpush.msrb.mxu2 %v795_v58 }
  0xd7   :  { %982 = vmatpush.msra.mxu1 %v1531_v63  ;;  %939 = vmatpush.msra.mxu0 %v760_v29 }
  0xd8   :  { %858 = vmatpush.msrb.mxu2 %v801_v25 }
  0xd9   :  { %984 = vmatpush.msra.mxu1 %v1533_v0  ;;  %943 = vmatpush.msra.mxu0 %v766_v2 }
  0xdb   :  { %986 = vmatpush.msra.mxu1 %v1545_v12  ;;  %947 = vmatpush.msra.mxu0 %v772_v44 }
  0xdd   :  { %988 = vmatpush.msra.mxu1 %v1584_v32  ;;  %951 = vmatpush.msra.mxu0 %v778_v55 }
  0xdf   :  { %990 = vmatpush.msra.mxu1 %v1587_v34  ;;  %955 = vmatpush.msra.mxu0 %v784_v57 }
  0xe1   :  { %992 = vmatpush.msra.mxu1 %v1589_v35  ;;  %959 = vmatpush.msra.mxu0 %v790_v27 }
  0xe3   :  { %994 = vmatpush.msra.mxu1 %v1594_v41  ;;  %963 = vmatpush.msra.mxu0 %v796_v13 }
  0xe5   :  { %996 = vmatpush.msra.mxu1 %v1606_v19  ;;  %967 = vmatpush.msra.mxu0 %v802_v49 }
  0xe7   :  { %998 = vmatpush.msra.mxu1 %v1617_v54 }
  0xe9   :  { %1000 = vmatpush.msra.mxu1 %v695_v3 }
  0xeb   :  { %1002 = vmatpush.msra.mxu1 %v697_v20 }
  0xed   :  { %1004 = vmatpush.msra.mxu1 %v699_v59 }
 0x130   :  { %v500_v0 = vpop.f32.mrf.mxu0 }
 0x132   :  { %v539_v8 = vpop.f32.mrf.mxu1 }
 0x134   :  { %v446_v52 = vpop.f32.mrf.mxu3 }
 0x13c   :  { %v345_v53 = vpop.f32.mrf.mxu2  ;;  %v645_v15 = vpop.f32.mrf.mxu3 }
 0x13d   :  { %v346_v62 = vadd.f32 %v1038_v37, %v345_v53 }
 0x13f   :  { %v447_v63 = vadd.f32 %v446_v52, %v346_v62 }
 0x141   :  { %v501_v7 = vadd.f32 %v500_v0, %v447_v63 }
 0x143   :  { %v540_v10 = vadd.f32 %v539_v8, %v501_v7 }
 0x144   :  { %v608_v12 = vpop.f32.mrf.mxu2 }
 0x145   :  { %v609_v14 = vadd.f32 %v608_v12, %v540_v10 }
 0x147   :  { %v646_v16 = vadd.f32 %v645_v15, %v609_v14 }
 0x149   :  { %v648_v33 = vmax.f32 %v646_v16, 0.0 }
 0x14b   :  { %v701_v26 = vand.u32 4294901760, %v648_v33 }
 0x14d   :  { %v702_v38 = vsub.f32 %v648_v33, %v701_v26  ;;  %807 = vmatmul.f32.vlgmr.msrb.gmra.mxu1 %v701_v26 }
 0x14f   :  { %861 = vmatmul.f32.vlgmr.msrb.gmra.mxu2 %v702_v38  ;;  %v703_v42 = vand.u32 4294901760, %v702_v38 }
 0x151   :  { %900 = vmatmul.f32.vlgmr.msrb.gmra.mxu3 %v703_v42  ;;  %v704_v43 = vsub.f32 %v702_v38, %v703_v42 }
 0x153   :  { %v705_v4 = vand.u32 4294901760, %v704_v43 }
 0x155   :  { %706 = vmatmul.f32.vlgmr.msrb.gmra.mxu0 %v705_v4  ;;  %1006 = vmatmul.f32.vlgmr.msra.gmra.mxu1 %v701_v26 }
 0x15d   :  { %969 = vmatmul.f32.vlgmr.msra.gmra.mxu0 %v701_v26 }
 0x1ca   :  { %v808_v24 = vpop.f32.mrf.mxu1 }
 0x1d2   :  { %v707_v32 = vpop.f32.mrf.mxu0  ;;  %v862_v41 = vpop.f32.mrf.mxu2 }
 0x1d3   :  { %v708_v34 = vadd.f32 %v1039_v51, %v707_v32  ;;  %v1007_v29 = vpop.f32.mrf.mxu1 }
 0x1d4   :  { %v901_v47 = vpop.f32.mrf.mxu3 }
 0x1d5   :  { %v809_v35 = vadd.f32 %v808_v24, %v708_v34 }
 0x1d7   :  { %v863_v46 = vadd.f32 %v862_v41, %v809_v35 }
 0x1d9   :  { %v902_v11 = vadd.f32 %v901_v47, %v863_v46 }
 0x1da   :  { %v970_v19 = vpop.f32.mrf.mxu0 }
 0x1db   :  { %v971_v28 = vadd.f32 %v970_v19, %v902_v11 }
 0x1dd   :  { %v1008_v36 = vadd.f32 %v1007_v29, %v971_v28 }
 0x1df   :  { %1010 = vst [vmem:[#allocation10] sm:$0xff] %v1008_v36 }
 0x1e0   :  { %1021 = dma.vmem_to_hbm [thread:$0]  %s1017_s24, 128, %s1019_s27, [#allocation4]  }
 0x1e1   :  { %1166 = dma.done.wait [#allocation4], 128  }
 0x1e2   :  { %1167 = vsyncadd [#allocation4], 4294967168 }
 0x1e3   :  { %1026 = vsyncpa [#allocation3], 1 }
 0x1e4   :  { %1027 = vsyncpa [#allocation6], 1 }
 0x1e5   :  { %1028 = vsyncpa [#allocation9], 1 }
 0x1e6   :  { %1029 = vsyncpa [#allocation4], 1 }

</bundles_post_ra>
